<compile_context>
chip_gen: v6e
topology: v6e:2x2x1
jax: 0.10.0
libtpu: 0.0.40
codegen_flags: <defaults>
</compile_context>

<pallas_src>
import jax
import jax.numpy as jnp
from jax.experimental import pallas as pl
from jax.experimental.pallas import tpu as pltpu

# ----------------------- synthetic config (small) -----------------------
VOCAB = 100
HIDDEN = 32
N_HEADS = 2
HEAD_DIM = HIDDEN // N_HEADS
FFN = 64
N_LAYERS = 2
MAX_POS = 32
TYPE_VOCAB = 2
N_LABELS = 5
LABELS_PAD = 128              # lane-dense padded logits width (sliced outside)
LN_EPS = 1e-5
PAD_IDX = 1                   # XLM-Roberta padding_idx
ATT_SCALE = 1.0 / (HEAD_DIM ** 0.5)
NEG_INF = -1e9

# packed embedding-table layout (all row offsets are multiples of 8 sublanes)
VOCAB_PAD = 104               # 100 -> 104
POS_OFF = VOCAB_PAD
TYPE_PAD = 8                  # 2 -> 8
TYPE_OFF = POS_OFF + MAX_POS
TBL_ROWS = TYPE_OFF + TYPE_PAD            # 144

# packed (1, HIDDEN) vector layout:
#   row 0: emb_ln_gamma, row 1: emb_ln_beta,
#   per layer l (base = 2 + 6*l): +0 attn_out_bias, +1 ln1_g, +2 ln1_b,
#                                 +3 ffn_out_bias,  +4 ln2_g, +5 ln2_b
N_VEC_ROWS = 2 + 6 * N_LAYERS


def _vrow(layer, k):
    return 2 + 6 * layer + k


# ------------------------- in-kernel helper math -------------------------
def _ln(x, g, b):
    # fused-moment LayerNorm: var = E[x^2] - E[x]^2 (independent reductions)
    m = jnp.mean(x, axis=-1, keepdims=True)
    m2 = jnp.mean(x * x, axis=-1, keepdims=True)
    var = m2 - m * m
    return (x - m) * jax.lax.rsqrt(var + LN_EPS) * g + b


def _gelu(y):
    # TODO(synk): HF XLM-Roberta uses exact erf-gelu; tanh approximation here.
    return 0.5 * y * (1.0 + jnp.tanh(0.7978845608028654 *
                                     (y + 0.044715 * y * y * y)))


# --------------------------- fused forward kernel ---------------------------
def _make_kernel(B, S):
    BS = B * S

    def kernel(idcol_ref, masklane_ref, tables_ref, vecs_ref, bqkv_ref,
               b1_ref, wqkv_ref, wo_ref, w1_ref, w2_ref, ner_ref, out_ref):
        f32, bf16 = jnp.float32, jnp.bfloat16

        input_ids = idcol_ref[0]                   # (BS, 1) int32
        type_ids = idcol_ref[1]                    # (BS, 1) int32
        att_lane = masklane_ref[0]                 # (1, BS) int32
        word_lane = masklane_ref[1]                # (1, BS) int32

        # ---- block (= per-batch) structure from iotas; no div/mod needed ----
        r_iota = jax.lax.broadcasted_iota(jnp.int32, (BS, BS), 0)
        c_iota = jax.lax.broadcasted_iota(jnp.int32, (BS, BS), 1)
        same_block = (jnp.bitwise_and(r_iota, -S) ==
                      jnp.bitwise_and(c_iota, -S))                 # (BS, BS)
        tril = (same_block & (c_iota <= r_iota)).astype(bf16)      # per-batch lower-tri
        triu = (same_block & (r_iota <= c_iota)).astype(bf16)      # per-batch upper-tri

        # ---- XLM-R position ids: cumsum over non-pad tokens (+ padding_idx) ----
        notpad = (input_ids != PAD_IDX)                            # (BS, 1) bool
        cum = jnp.dot(tril, notpad.astype(bf16),
                      preferred_element_type=f32)                  # (BS, 1)
        pos_ids = (cum.astype(jnp.int32) * notpad.astype(jnp.int32)
                   + PAD_IDX)                                      # (BS, 1) int32

        # ---- embedding lookups as one-hot matmuls on the MXU ----
        word_oh = (input_ids ==
                   jax.lax.broadcasted_iota(jnp.int32, (BS, VOCAB_PAD), 1)
                   ).astype(bf16)
        pos_oh = (pos_ids ==
                  jax.lax.broadcasted_iota(jnp.int32, (BS, MAX_POS), 1)
                  ).astype(bf16)
        type_oh = (type_ids ==
                   jax.lax.broadcasted_iota(jnp.int32, (BS, TYPE_PAD), 1)
                   ).astype(bf16)

        tbl = tables_ref[...]                                      # (144, H) bf16
        emb = (jnp.dot(word_oh, tbl[0:VOCAB_PAD],
                       preferred_element_type=f32)
               + jnp.dot(pos_oh, tbl[POS_OFF:POS_OFF + MAX_POS],
                         preferred_element_type=f32)
               + jnp.dot(type_oh, tbl[TYPE_OFF:TBL_ROWS],
                         preferred_element_type=f32))              # (BS, H) f32

        x = _ln(emb, vecs_ref[0], vecs_ref[1])                     # (BS, H)

        # ---- block-diagonal additive attention bias (per-batch + key pad) ----
        attn_bias = jnp.where(same_block & (att_lane > 0), 0.0, NEG_INF)

        for l in range(N_LAYERS):                                  # static unroll
            base = 2 + 6 * l
            xb = x.astype(bf16)
            wqkv_l = wqkv_ref[l]                                   # (6, H, hd) bf16
            bqkv_l = bqkv_ref[l]                                   # (6, 1, hd) f32
            wo_l = wo_ref[l]                                       # (H, H) bf16

            attn = None
            for h in range(N_HEADS):                               # static unroll
                q = jnp.dot(xb, wqkv_l[h],
                            preferred_element_type=f32) + bqkv_l[h]
                k = jnp.dot(xb, wqkv_l[N_HEADS + h],
                            preferred_element_type=f32) + bqkv_l[N_HEADS + h]
                v = jnp.dot(xb, wqkv_l[2 * N_HEADS + h],
                            preferred_element_type=f32) + bqkv_l[2 * N_HEADS + h]
                # scores over the whole batch at once; cross-batch masked out
                s = jax.lax.dot_general(
                    q.astype(bf16), k.astype(bf16),
                    (((1,), (1,)), ((), ())),
                    preferred_element_type=f32) * ATT_SCALE        # (BS, BS)
                s = s + attn_bias
                s = s - jnp.max(s, axis=-1, keepdims=True)
                p = jnp.exp(s)
                p = p * pl.reciprocal(jnp.sum(p, axis=-1, keepdims=True),
                                      approx=True)
                ctx = jnp.dot(p.astype(bf16), v.astype(bf16),
                              preferred_element_type=f32)          # (BS, hd)
                part = jnp.dot(ctx.astype(bf16),
                               wo_l[h * HEAD_DIM:(h + 1) * HEAD_DIM, :],
                               preferred_element_type=f32)         # (BS, H)
                attn = part if attn is None else attn + part
            attn = attn + vecs_ref[base + 0]                       # output bias

            x = _ln(x + attn, vecs_ref[base + 1], vecs_ref[base + 2])

            h1 = _gelu(jnp.dot(x.astype(bf16), w1_ref[l],
                               preferred_element_type=f32) + b1_ref[l])
            h2 = jnp.dot(h1.astype(bf16), w2_ref[l],
                         preferred_element_type=f32) + vecs_ref[base + 3]
            x = _ln(x + h2, vecs_ref[base + 4], vecs_ref[base + 5])

        # ---- NerHead: left-pack word-start rows per batch via a selection
        #      matmul built from the word mask (rank == slot index) ----
        wcum = jnp.dot(word_lane.astype(bf16), triu,
                       preferred_element_type=f32)                 # (1, BS)
        rank = wcum.astype(jnp.int32) - 1                          # (1, BS)
        slot = jnp.bitwise_and(r_iota, S - 1)                      # row idx within batch
        sel = (same_block & (rank == slot) & (word_lane > 0)).astype(bf16)

        words = jnp.dot(sel, x.astype(bf16),
                        preferred_element_type=f32)                # (BS, H)
        ner = ner_ref[...]                                         # (H+8, 128) f32
        logits = jnp.dot(words.astype(bf16), ner[0:HIDDEN].astype(bf16),
                         preferred_element_type=f32) + ner[HIDDEN:HIDDEN + 1]
        out_ref[...] = logits.astype(out_ref.dtype)                # (BS, 128)

    return kernel


# -------------------------- parameter construction --------------------------
def init_params(key):
    keys = iter(jax.random.split(key, 16))

    def nrm(shape, scale=0.02):
        return scale * jax.random.normal(next(keys), shape, dtype=jnp.float32)

    # packed embedding tables (word | pos | type), bf16 for the MXU
    tables = jnp.zeros((TBL_ROWS, HIDDEN), jnp.float32)
    tables = tables.at[:VOCAB].set(nrm((VOCAB, HIDDEN)))
    tables = tables.at[POS_OFF:POS_OFF + MAX_POS].set(nrm((MAX_POS, HIDDEN)))
    tables = tables.at[TYPE_OFF:TYPE_OFF + TYPE_VOCAB].set(
        nrm((TYPE_VOCAB, HIDDEN)))

    # packed (1, HIDDEN) vectors: LN gammas = 1, everything else = 0
    vecs = jnp.zeros((N_VEC_ROWS, 1, HIDDEN), jnp.float32)
    gamma_rows = [0] + [_vrow(l, k) for l in range(N_LAYERS) for k in (1, 4)]
    vecs = vecs.at[jnp.asarray(gamma_rows)].set(1.0)

    # NER projection packed with its bias (row HIDDEN); kept f32 so the bias
    # add stays exact, weight rows are cast to bf16 in-kernel
    ner = jnp.zeros((HIDDEN + 8, LABELS_PAD), jnp.float32)
    ner = ner.at[:HIDDEN, :N_LABELS].set(nrm((HIDDEN, N_LABELS)))

    return {
        "tables": tables.astype(jnp.bfloat16),
        "vecs": vecs,
        # per-head q/k/v biases: index = part * N_HEADS + head, part in {q,k,v}
        "bqkv": jnp.zeros((N_LAYERS, 3 * N_HEADS, 1, HEAD_DIM), jnp.float32),
        "b1": jnp.zeros((N_LAYERS, 1, FFN), jnp.float32),
        # per-head q/k/v weights (no lane-unaligned slicing in the kernel)
        "wqkv": nrm((N_LAYERS, 3 * N_HEADS, HIDDEN, HEAD_DIM)).astype(jnp.bfloat16),
        "wo": nrm((N_LAYERS, HIDDEN, HIDDEN)).astype(jnp.bfloat16),
        "w1": nrm((N_LAYERS, HIDDEN, FFN)).astype(jnp.bfloat16),
        "w2": nrm((N_LAYERS, FFN, HIDDEN)).astype(jnp.bfloat16),
        "ner": ner,
    }


def _cost_estimate(B, S, args):
    BS = B * S
    flops = 2 * BS * (VOCAB_PAD + MAX_POS + TYPE_PAD) * HIDDEN     # embeddings
    flops += 4 * BS * BS                                           # cumsum matmuls
    per_layer = (3 * N_HEADS * 2 * BS * HIDDEN * HEAD_DIM          # q/k/v
                 + N_HEADS * 2 * BS * BS * HEAD_DIM * 2            # scores + ctx
                 + N_HEADS * 2 * BS * HEAD_DIM * HIDDEN            # out proj
                 + 2 * BS * HIDDEN * FFN * 2)                      # ffn
    flops += N_LAYERS * per_layer
    flops += 2 * BS * BS * HIDDEN + 2 * BS * HIDDEN * LABELS_PAD   # ner head
    transcendentals = N_LAYERS * (N_HEADS * BS * BS + BS * FFN)
    bytes_accessed = sum(int(a.size) * a.dtype.itemsize for a in args)
    bytes_accessed += BS * LABELS_PAD * 4
    return pl.CostEstimate(flops=int(flops),
                           transcendentals=int(transcendentals),
                           bytes_accessed=int(bytes_accessed))


# ------------------------------- forward pass -------------------------------
def xlm_roberta_ner_forward(params, input_ids, attention_mask,
                            token_type_ids, mask):
    """Equivalent of XLMRobertaNer.forward -> (logits, pad_mask)."""
    B, S = input_ids.shape
    assert S & (S - 1) == 0, "kernel assumes power-of-two sequence length"
    BS = B * S

    # tiny int32 side inputs in the layouts the kernel wants (host reshapes
    # are free); everything else (gathers, cumsums, one-hots) happens on-chip
    ids_col = jnp.stack([input_ids.reshape(BS, 1),
                         token_type_ids.reshape(BS, 1)],
                        axis=0).astype(jnp.int32)                  # (2, BS, 1)
    masks_lane = jnp.stack([attention_mask.reshape(1, BS),
                            mask.reshape(1, BS)],
                           axis=0).astype(jnp.int32)               # (2, 1, BS)

    args = (ids_col, masks_lane, params["tables"], params["vecs"],
            params["bqkv"], params["b1"], params["wqkv"], params["wo"],
            params["w1"], params["w2"], params["ner"])

    def whole_spec(a):
        nd = a.ndim
        return pl.BlockSpec(tuple(a.shape), lambda i, _nd=nd: (0,) * _nd)

    out = pl.pallas_call(
        _make_kernel(B, S),
        out_shape=jax.ShapeDtypeStruct((BS, LABELS_PAD), jnp.float32),
        grid=(1,),                                   # single step: whole batch
        in_specs=[whole_spec(a) for a in args],
        out_specs=pl.BlockSpec((BS, LABELS_PAD), lambda i: (0, 0)),
        compiler_params=pltpu.CompilerParams(
            dimension_semantics=("arbitrary",)),
        cost_estimate=_cost_estimate(B, S, args),
    )(*args)

    logits = out.reshape(B, S, LABELS_PAD)[:, :, :N_LABELS]

    counts = jnp.sum(mask, axis=1)
    pad_mask = jnp.arange(S)[None, :] < counts[:, None]            # (B, S) bool

    # TODO(synk): CRF decode / eval_loss (Viterbi DP) are not part of forward();
    # not implemented as Pallas kernels here.
    return logits, pad_mask


# ----------------------------------- main -----------------------------------
if __name__ == "__main__":
    key = jax.random.PRNGKey(0)
    pkey, ikey = jax.random.split(key, 2)
    params = init_params(pkey)

    B, S = 2, 8
    input_ids = jax.random.randint(ikey, (B, S), 2, VOCAB, dtype=jnp.int32)
    attention_mask = jnp.array([[1, 1, 1, 1, 1, 1, 1, 1],
                                [1, 1, 1, 1, 1, 1, 0, 0]], jnp.int32)
    # padded positions hold the padding token (matches XLM-R convention)
    input_ids = jnp.where(attention_mask == 1, input_ids, PAD_IDX)
    token_type_ids = jnp.zeros((B, S), jnp.int32)
    mask = jnp.array([[1, 1, 0, 1, 0, 1, 1, 0],
                      [1, 0, 1, 1, 0, 0, 0, 0]], jnp.int32)

    fwd = jax.jit(xlm_roberta_ner_forward)
    logits, pad_mask = fwd(params, input_ids, attention_mask,
                           token_type_ids, mask)
    jax.block_until_ready((logits, pad_mask))

    assert logits.shape == (B, S, N_LABELS)
    assert pad_mask.shape == (B, S) and pad_mask.dtype == jnp.bool_
    assert bool(jnp.all(jnp.isfinite(logits)))
    print("KERNEL_OK")
</pallas_src>

<mosaic_0001>
module attributes {stable_mosaic.version = 11 : i64} {
  func.func @kernel(%arg0: i32, %arg1: memref<2x16x1xi32, #tpu.memory_space<vmem>>, %arg2: memref<2x1x16xi32, #tpu.memory_space<vmem>>, %arg3: memref<144x32xbf16, #tpu.memory_space<vmem>>, %arg4: memref<14x1x32xf32, #tpu.memory_space<vmem>>, %arg5: memref<2x6x1x16xf32, #tpu.memory_space<vmem>>, %arg6: memref<2x1x64xf32, #tpu.memory_space<vmem>>, %arg7: memref<2x6x32x16xbf16, #tpu.memory_space<vmem>>, %arg8: memref<2x32x32xbf16, #tpu.memory_space<vmem>>, %arg9: memref<2x32x64xbf16, #tpu.memory_space<vmem>>, %arg10: memref<2x64x32xbf16, #tpu.memory_space<vmem>>, %arg11: memref<40x128xf32, #tpu.memory_space<vmem>>, %arg12: memref<16x128xf32, #tpu.memory_space<vmem>>) attributes {dimension_semantics = [#tpu.dimension_semantics<arbitrary>], iteration_bounds = array<i64: 1>, scalar_prefetch = 0 : i64, scratch_operands = 0 : i64, tpu.core_type = #tpu.core_type<tc>, window_params = [{pipeline_mode = #tpu.pipeline_mode<synchronous>, transform_indices = @transform_0, window_bounds = array<i64: 2, 16, 1>}, {pipeline_mode = #tpu.pipeline_mode<synchronous>, transform_indices = @transform_1, window_bounds = array<i64: 2, 1, 16>}, {pipeline_mode = #tpu.pipeline_mode<synchronous>, transform_indices = @transform_2, window_bounds = array<i64: 144, 32>}, {pipeline_mode = #tpu.pipeline_mode<synchronous>, transform_indices = @transform_3, window_bounds = array<i64: 14, 1, 32>}, {pipeline_mode = #tpu.pipeline_mode<synchronous>, transform_indices = @transform_4, window_bounds = array<i64: 2, 6, 1, 16>}, {pipeline_mode = #tpu.pipeline_mode<synchronous>, transform_indices = @transform_5, window_bounds = array<i64: 2, 1, 64>}, {pipeline_mode = #tpu.pipeline_mode<synchronous>, transform_indices = @transform_6, window_bounds = array<i64: 2, 6, 32, 16>}, {pipeline_mode = #tpu.pipeline_mode<synchronous>, transform_indices = @transform_7, window_bounds = array<i64: 2, 32, 32>}, {pipeline_mode = #tpu.pipeline_mode<synchronous>, transform_indices = @transform_8, window_bounds = array<i64: 2, 32, 64>}, {pipeline_mode = #tpu.pipeline_mode<synchronous>, transform_indices = @transform_9, window_bounds = array<i64: 2, 64, 32>}, {pipeline_mode = #tpu.pipeline_mode<synchronous>, transform_indices = @transform_10, window_bounds = array<i64: 40, 128>}, {pipeline_mode = #tpu.pipeline_mode<synchronous>, transform_indices = @transform_11, window_bounds = array<i64: 16, 128>}]} {
    %c0 = arith.constant 0 : index
    %c0_0 = arith.constant 0 : index
    %c0_1 = arith.constant 0 : index
    %0 = vector.load %arg1[%c0, %c0_0, %c0_1] : memref<2x16x1xi32, #tpu.memory_space<vmem>>, vector<1x16x1xi32>
    %1 = vector.shape_cast %0 : vector<1x16x1xi32> to vector<16x1xi32>
    %c1 = arith.constant 1 : index
    %c0_2 = arith.constant 0 : index
    %c0_3 = arith.constant 0 : index
    %2 = vector.load %arg1[%c1, %c0_2, %c0_3] : memref<2x16x1xi32, #tpu.memory_space<vmem>>, vector<1x16x1xi32>
    %3 = vector.shape_cast %2 : vector<1x16x1xi32> to vector<16x1xi32>
    %c0_4 = arith.constant 0 : index
    %c0_5 = arith.constant 0 : index
    %c0_6 = arith.constant 0 : index
    %4 = vector.load %arg2[%c0_4, %c0_5, %c0_6] : memref<2x1x16xi32, #tpu.memory_space<vmem>>, vector<1x1x16xi32>
    %5 = vector.shape_cast %4 : vector<1x1x16xi32> to vector<1x16xi32>
    %c1_7 = arith.constant 1 : index
    %c0_8 = arith.constant 0 : index
    %c0_9 = arith.constant 0 : index
    %6 = vector.load %arg2[%c1_7, %c0_8, %c0_9] : memref<2x1x16xi32, #tpu.memory_space<vmem>>, vector<1x1x16xi32>
    %7 = vector.shape_cast %6 : vector<1x1x16xi32> to vector<1x16xi32>
    %8 = tpu.iota {dimensions = array<i32: 0>} : vector<16x16xi32>
    %9 = tpu.iota {dimensions = array<i32: 1>} : vector<16x16xi32>
    %c-8_i32 = arith.constant -8 : i32
    %10 = vector.broadcast %c-8_i32 : i32 to vector<16x16xi32>
    %11 = arith.andi %8, %10 : vector<16x16xi32>
    %c-8_i32_10 = arith.constant -8 : i32
    %12 = vector.broadcast %c-8_i32_10 : i32 to vector<16x16xi32>
    %13 = arith.andi %9, %12 : vector<16x16xi32>
    %14 = arith.cmpi eq, %11, %13 : vector<16x16xi32>
    %15 = arith.cmpi sle, %9, %8 : vector<16x16xi32>
    %16 = arith.andi %14, %15 : vector<16x16xi1>
    %17 = arith.extui %16 : vector<16x16xi1> to vector<16x16xi32>
    %18 = arith.sitofp %17 : vector<16x16xi32> to vector<16x16xf32>
    %19 = arith.truncf %18 : vector<16x16xf32> to vector<16x16xbf16>
    %20 = arith.cmpi sle, %8, %9 : vector<16x16xi32>
    %21 = arith.andi %14, %20 : vector<16x16xi1>
    %22 = arith.extui %21 : vector<16x16xi1> to vector<16x16xi32>
    %23 = arith.sitofp %22 : vector<16x16xi32> to vector<16x16xf32>
    %24 = arith.truncf %23 : vector<16x16xf32> to vector<16x16xbf16>
    %c1_i32 = arith.constant 1 : i32
    %25 = vector.broadcast %c1_i32 : i32 to vector<16x1xi32>
    %26 = arith.cmpi ne, %1, %25 : vector<16x1xi32>
    %27 = arith.extui %26 : vector<16x1xi1> to vector<16x1xi32>
    %28 = arith.sitofp %27 : vector<16x1xi32> to vector<16x1xf32>
    %29 = arith.truncf %28 : vector<16x1xf32> to vector<16x1xbf16>
    %cst = arith.constant dense<0.000000e+00> : vector<16x1xf32>
    %30 = tpu.matmul %19, %29, %cst {dimension_numbers = #tpu.dot_dimension_numbers<[1], [0], [0], [1], [0, 0, 1, 1], [], []>} : vector<16x16xbf16>, vector<16x1xbf16>, vector<16x1xf32> -> vector<16x1xf32>
    %31 = arith.fptosi %30 : vector<16x1xf32> to vector<16x1xi32>
    %32 = arith.extui %26 : vector<16x1xi1> to vector<16x1xi32>
    %33 = arith.muli %31, %32 : vector<16x1xi32>
    %c1_i32_11 = arith.constant 1 : i32
    %34 = vector.broadcast %c1_i32_11 : i32 to vector<16x1xi32>
    %35 = arith.addi %33, %34 : vector<16x1xi32>
    %36 = tpu.iota {dimensions = array<i32: 1>} : vector<16x104xi32>
    %37 = vector.broadcast %1 : vector<16x1xi32> to vector<16x104xi32>
    %38 = arith.cmpi eq, %37, %36 : vector<16x104xi32>
    %39 = arith.extui %38 : vector<16x104xi1> to vector<16x104xi32>
    %40 = arith.sitofp %39 : vector<16x104xi32> to vector<16x104xf32>
    %41 = arith.truncf %40 : vector<16x104xf32> to vector<16x104xbf16>
    %42 = tpu.iota {dimensions = array<i32: 1>} : vector<16x32xi32>
    %43 = vector.broadcast %35 : vector<16x1xi32> to vector<16x32xi32>
    %44 = arith.cmpi eq, %43, %42 : vector<16x32xi32>
    %45 = arith.extui %44 : vector<16x32xi1> to vector<16x32xi32>
    %46 = arith.sitofp %45 : vector<16x32xi32> to vector<16x32xf32>
    %47 = arith.truncf %46 : vector<16x32xf32> to vector<16x32xbf16>
    %48 = tpu.iota {dimensions = array<i32: 1>} : vector<16x8xi32>
    %49 = vector.broadcast %3 : vector<16x1xi32> to vector<16x8xi32>
    %50 = arith.cmpi eq, %49, %48 : vector<16x8xi32>
    %51 = arith.extui %50 : vector<16x8xi1> to vector<16x8xi32>
    %52 = arith.sitofp %51 : vector<16x8xi32> to vector<16x8xf32>
    %53 = arith.truncf %52 : vector<16x8xf32> to vector<16x8xbf16>
    %c0_12 = arith.constant 0 : index
    %c0_13 = arith.constant 0 : index
    %54 = vector.load %arg3[%c0_12, %c0_13] : memref<144x32xbf16, #tpu.memory_space<vmem>>, vector<144x32xbf16>
    %55 = vector.extract_strided_slice %54 {offsets = [0, 0], sizes = [104, 32], strides = [1, 1]} : vector<144x32xbf16> to vector<104x32xbf16>
    %cst_14 = arith.constant dense<0.000000e+00> : vector<16x32xf32>
    %56 = tpu.matmul %41, %55, %cst_14 {dimension_numbers = #tpu.dot_dimension_numbers<[1], [0], [0], [1], [0, 0, 1, 1], [], []>} : vector<16x104xbf16>, vector<104x32xbf16>, vector<16x32xf32> -> vector<16x32xf32>
    %57 = vector.extract_strided_slice %54 {offsets = [104, 0], sizes = [32, 32], strides = [1, 1]} : vector<144x32xbf16> to vector<32x32xbf16>
    %cst_15 = arith.constant dense<0.000000e+00> : vector<16x32xf32>
    %58 = tpu.matmul %47, %57, %cst_15 {dimension_numbers = #tpu.dot_dimension_numbers<[1], [0], [0], [1], [0, 0, 1, 1], [], []>} : vector<16x32xbf16>, vector<32x32xbf16>, vector<16x32xf32> -> vector<16x32xf32>
    %59 = arith.addf %56, %58 : vector<16x32xf32>
    %60 = vector.extract_strided_slice %54 {offsets = [136, 0], sizes = [8, 32], strides = [1, 1]} : vector<144x32xbf16> to vector<8x32xbf16>
    %cst_16 = arith.constant dense<0.000000e+00> : vector<16x32xf32>
    %61 = tpu.matmul %53, %60, %cst_16 {dimension_numbers = #tpu.dot_dimension_numbers<[1], [0], [0], [1], [0, 0, 1, 1], [], []>} : vector<16x8xbf16>, vector<8x32xbf16>, vector<16x32xf32> -> vector<16x32xf32>
    %62 = arith.addf %59, %61 : vector<16x32xf32>
    %c0_17 = arith.constant 0 : index
    %c0_18 = arith.constant 0 : index
    %c0_19 = arith.constant 0 : index
    %63 = vector.load %arg4[%c0_17, %c0_18, %c0_19] : memref<14x1x32xf32, #tpu.memory_space<vmem>>, vector<1x1x32xf32>
    %64 = vector.shape_cast %63 : vector<1x1x32xf32> to vector<1x32xf32>
    %c1_20 = arith.constant 1 : index
    %c0_21 = arith.constant 0 : index
    %c0_22 = arith.constant 0 : index
    %65 = vector.load %arg4[%c1_20, %c0_21, %c0_22] : memref<14x1x32xf32, #tpu.memory_space<vmem>>, vector<1x1x32xf32>
    %66 = vector.shape_cast %65 : vector<1x1x32xf32> to vector<1x32xf32>
    %cst_23 = arith.constant dense<0.000000e+00> : vector<16xf32>
    %67 = vector.multi_reduction <add>, %62, %cst_23 [1] : vector<16x32xf32> to vector<16xf32>
    %68 = vector.shape_cast %67 : vector<16xf32> to vector<16x1xf32>
    %cst_24 = arith.constant 3.200000e+01 : f32
    %69 = vector.broadcast %cst_24 : f32 to vector<16x1xf32>
    %70 = arith.divf %68, %69 : vector<16x1xf32>
    %71 = arith.mulf %62, %62 : vector<16x32xf32>
    %cst_25 = arith.constant dense<0.000000e+00> : vector<16xf32>
    %72 = vector.multi_reduction <add>, %71, %cst_25 [1] : vector<16x32xf32> to vector<16xf32>
    %73 = vector.shape_cast %72 : vector<16xf32> to vector<16x1xf32>
    %cst_26 = arith.constant 3.200000e+01 : f32
    %74 = vector.broadcast %cst_26 : f32 to vector<16x1xf32>
    %75 = arith.divf %73, %74 : vector<16x1xf32>
    %76 = arith.mulf %70, %70 : vector<16x1xf32>
    %77 = arith.subf %75, %76 : vector<16x1xf32>
    %78 = vector.broadcast %70 : vector<16x1xf32> to vector<16x32xf32>
    %79 = arith.subf %62, %78 : vector<16x32xf32>
    %cst_27 = arith.constant 9.99999974E-6 : f32
    %80 = vector.broadcast %cst_27 : f32 to vector<16x1xf32>
    %81 = arith.addf %77, %80 : vector<16x1xf32>
    %82 = math.rsqrt %81 : vector<16x1xf32>
    %83 = vector.broadcast %82 : vector<16x1xf32> to vector<16x32xf32>
    %84 = arith.mulf %79, %83 : vector<16x32xf32>
    %85 = vector.broadcast %64 : vector<1x32xf32> to vector<16x32xf32>
    %86 = arith.mulf %84, %85 : vector<16x32xf32>
    %87 = vector.broadcast %66 : vector<1x32xf32> to vector<16x32xf32>
    %88 = arith.addf %86, %87 : vector<16x32xf32>
    %c0_i32 = arith.constant 0 : i32
    %89 = vector.broadcast %c0_i32 : i32 to vector<1x16xi32>
    %90 = arith.cmpi sgt, %5, %89 : vector<1x16xi32>
    %91 = vector.broadcast %90 : vector<1x16xi1> to vector<16x16xi1>
    %92 = arith.andi %14, %91 : vector<16x16xi1>
    %cst_28 = arith.constant 0.000000e+00 : f32
    %cst_29 = arith.constant -1.000000e+09 : f32
    %93 = vector.broadcast %cst_28 : f32 to vector<16x16xf32>
    %94 = vector.broadcast %cst_29 : f32 to vector<16x16xf32>
    %95 = arith.select %92, %93, %94 : vector<16x16xi1>, vector<16x16xf32>
    %96 = arith.truncf %88 : vector<16x32xf32> to vector<16x32xbf16>
    %c0_30 = arith.constant 0 : index
    %c0_31 = arith.constant 0 : index
    %c0_32 = arith.constant 0 : index
    %c0_33 = arith.constant 0 : index
    %97 = vector.load %arg7[%c0_30, %c0_31, %c0_32, %c0_33] : memref<2x6x32x16xbf16, #tpu.memory_space<vmem>>, vector<1x6x32x16xbf16>
    %98 = vector.shape_cast %97 : vector<1x6x32x16xbf16> to vector<6x32x16xbf16>
    %c0_34 = arith.constant 0 : index
    %c0_35 = arith.constant 0 : index
    %c0_36 = arith.constant 0 : index
    %c0_37 = arith.constant 0 : index
    %99 = vector.load %arg5[%c0_34, %c0_35, %c0_36, %c0_37] : memref<2x6x1x16xf32, #tpu.memory_space<vmem>>, vector<1x6x1x16xf32>
    %100 = vector.shape_cast %99 : vector<1x6x1x16xf32> to vector<6x1x16xf32>
    %c0_38 = arith.constant 0 : index
    %c0_39 = arith.constant 0 : index
    %c0_40 = arith.constant 0 : index
    %101 = vector.load %arg8[%c0_38, %c0_39, %c0_40] : memref<2x32x32xbf16, #tpu.memory_space<vmem>>, vector<1x32x32xbf16>
    %102 = vector.shape_cast %101 : vector<1x32x32xbf16> to vector<32x32xbf16>
    %103 = vector.extract_strided_slice %98 {offsets = [0, 0, 0], sizes = [1, 32, 16], strides = [1, 1, 1]} : vector<6x32x16xbf16> to vector<1x32x16xbf16>
    %104 = vector.shape_cast %103 : vector<1x32x16xbf16> to vector<32x16xbf16>
    %cst_41 = arith.constant dense<0.000000e+00> : vector<16x16xf32>
    %105 = tpu.matmul %96, %104, %cst_41 {dimension_numbers = #tpu.dot_dimension_numbers<[1], [0], [0], [1], [0, 0, 1, 1], [], []>} : vector<16x32xbf16>, vector<32x16xbf16>, vector<16x16xf32> -> vector<16x16xf32>
    %106 = vector.extract_strided_slice %100 {offsets = [0, 0, 0], sizes = [1, 1, 16], strides = [1, 1, 1]} : vector<6x1x16xf32> to vector<1x1x16xf32>
    %107 = vector.shape_cast %106 : vector<1x1x16xf32> to vector<1x16xf32>
    %108 = vector.broadcast %107 : vector<1x16xf32> to vector<16x16xf32>
    %109 = arith.addf %105, %108 : vector<16x16xf32>
    %110 = vector.extract_strided_slice %98 {offsets = [2, 0, 0], sizes = [1, 32, 16], strides = [1, 1, 1]} : vector<6x32x16xbf16> to vector<1x32x16xbf16>
    %111 = vector.shape_cast %110 : vector<1x32x16xbf16> to vector<32x16xbf16>
    %cst_42 = arith.constant dense<0.000000e+00> : vector<16x16xf32>
    %112 = tpu.matmul %96, %111, %cst_42 {dimension_numbers = #tpu.dot_dimension_numbers<[1], [0], [0], [1], [0, 0, 1, 1], [], []>} : vector<16x32xbf16>, vector<32x16xbf16>, vector<16x16xf32> -> vector<16x16xf32>
    %113 = vector.extract_strided_slice %100 {offsets = [2, 0, 0], sizes = [1, 1, 16], strides = [1, 1, 1]} : vector<6x1x16xf32> to vector<1x1x16xf32>
    %114 = vector.shape_cast %113 : vector<1x1x16xf32> to vector<1x16xf32>
    %115 = vector.broadcast %114 : vector<1x16xf32> to vector<16x16xf32>
    %116 = arith.addf %112, %115 : vector<16x16xf32>
    %117 = vector.extract_strided_slice %98 {offsets = [4, 0, 0], sizes = [1, 32, 16], strides = [1, 1, 1]} : vector<6x32x16xbf16> to vector<1x32x16xbf16>
    %118 = vector.shape_cast %117 : vector<1x32x16xbf16> to vector<32x16xbf16>
    %cst_43 = arith.constant dense<0.000000e+00> : vector<16x16xf32>
    %119 = tpu.matmul %96, %118, %cst_43 {dimension_numbers = #tpu.dot_dimension_numbers<[1], [0], [0], [1], [0, 0, 1, 1], [], []>} : vector<16x32xbf16>, vector<32x16xbf16>, vector<16x16xf32> -> vector<16x16xf32>
    %120 = vector.extract_strided_slice %100 {offsets = [4, 0, 0], sizes = [1, 1, 16], strides = [1, 1, 1]} : vector<6x1x16xf32> to vector<1x1x16xf32>
    %121 = vector.shape_cast %120 : vector<1x1x16xf32> to vector<1x16xf32>
    %122 = vector.broadcast %121 : vector<1x16xf32> to vector<16x16xf32>
    %123 = arith.addf %119, %122 : vector<16x16xf32>
    %124 = arith.truncf %109 : vector<16x16xf32> to vector<16x16xbf16>
    %125 = arith.truncf %116 : vector<16x16xf32> to vector<16x16xbf16>
    %cst_44 = arith.constant dense<0.000000e+00> : vector<16x16xf32>
    %126 = tpu.matmul %124, %125, %cst_44 {dimension_numbers = #tpu.dot_dimension_numbers<[1], [1], [0], [0], [0, 0, 1, 0], [], []>} : vector<16x16xbf16>, vector<16x16xbf16>, vector<16x16xf32> -> vector<16x16xf32>
    %cst_45 = arith.constant 2.500000e-01 : f32
    %127 = vector.broadcast %cst_45 : f32 to vector<16x16xf32>
    %128 = arith.mulf %126, %127 : vector<16x16xf32>
    %129 = arith.addf %128, %95 : vector<16x16xf32>
    %cst_46 = arith.constant dense<0xFF800000> : vector<16xf32>
    %130 = vector.multi_reduction <maximumf>, %129, %cst_46 [1] : vector<16x16xf32> to vector<16xf32>
    %131 = vector.shape_cast %130 : vector<16xf32> to vector<16x1xf32>
    %132 = vector.broadcast %131 : vector<16x1xf32> to vector<16x16xf32>
    %133 = arith.subf %129, %132 : vector<16x16xf32>
    %134 = math.exp %133 : vector<16x16xf32>
    %cst_47 = arith.constant dense<0.000000e+00> : vector<16xf32>
    %135 = vector.multi_reduction <add>, %134, %cst_47 [1] : vector<16x16xf32> to vector<16xf32>
    %136 = vector.shape_cast %135 : vector<16xf32> to vector<16x1xf32>
    %137 = tpu.reciprocal %136 {approx = true} : vector<16x1xf32> -> vector<16x1xf32>
    %138 = vector.broadcast %137 : vector<16x1xf32> to vector<16x16xf32>
    %139 = arith.mulf %134, %138 : vector<16x16xf32>
    %140 = arith.truncf %139 : vector<16x16xf32> to vector<16x16xbf16>
    %141 = arith.truncf %123 : vector<16x16xf32> to vector<16x16xbf16>
    %cst_48 = arith.constant dense<0.000000e+00> : vector<16x16xf32>
    %142 = tpu.matmul %140, %141, %cst_48 {dimension_numbers = #tpu.dot_dimension_numbers<[1], [0], [0], [1], [0, 0, 1, 1], [], []>} : vector<16x16xbf16>, vector<16x16xbf16>, vector<16x16xf32> -> vector<16x16xf32>
    %143 = arith.truncf %142 : vector<16x16xf32> to vector<16x16xbf16>
    %144 = vector.extract_strided_slice %102 {offsets = [0, 0], sizes = [16, 32], strides = [1, 1]} : vector<32x32xbf16> to vector<16x32xbf16>
    %cst_49 = arith.constant dense<0.000000e+00> : vector<16x32xf32>
    %145 = tpu.matmul %143, %144, %cst_49 {dimension_numbers = #tpu.dot_dimension_numbers<[1], [0], [0], [1], [0, 0, 1, 1], [], []>} : vector<16x16xbf16>, vector<16x32xbf16>, vector<16x32xf32> -> vector<16x32xf32>
    %146 = vector.extract_strided_slice %98 {offsets = [1, 0, 0], sizes = [1, 32, 16], strides = [1, 1, 1]} : vector<6x32x16xbf16> to vector<1x32x16xbf16>
    %147 = vector.shape_cast %146 : vector<1x32x16xbf16> to vector<32x16xbf16>
    %cst_50 = arith.constant dense<0.000000e+00> : vector<16x16xf32>
    %148 = tpu.matmul %96, %147, %cst_50 {dimension_numbers = #tpu.dot_dimension_numbers<[1], [0], [0], [1], [0, 0, 1, 1], [], []>} : vector<16x32xbf16>, vector<32x16xbf16>, vector<16x16xf32> -> vector<16x16xf32>
    %149 = vector.extract_strided_slice %100 {offsets = [1, 0, 0], sizes = [1, 1, 16], strides = [1, 1, 1]} : vector<6x1x16xf32> to vector<1x1x16xf32>
    %150 = vector.shape_cast %149 : vector<1x1x16xf32> to vector<1x16xf32>
    %151 = vector.broadcast %150 : vector<1x16xf32> to vector<16x16xf32>
    %152 = arith.addf %148, %151 : vector<16x16xf32>
    %153 = vector.extract_strided_slice %98 {offsets = [3, 0, 0], sizes = [1, 32, 16], strides = [1, 1, 1]} : vector<6x32x16xbf16> to vector<1x32x16xbf16>
    %154 = vector.shape_cast %153 : vector<1x32x16xbf16> to vector<32x16xbf16>
    %cst_51 = arith.constant dense<0.000000e+00> : vector<16x16xf32>
    %155 = tpu.matmul %96, %154, %cst_51 {dimension_numbers = #tpu.dot_dimension_numbers<[1], [0], [0], [1], [0, 0, 1, 1], [], []>} : vector<16x32xbf16>, vector<32x16xbf16>, vector<16x16xf32> -> vector<16x16xf32>
    %156 = vector.extract_strided_slice %100 {offsets = [3, 0, 0], sizes = [1, 1, 16], strides = [1, 1, 1]} : vector<6x1x16xf32> to vector<1x1x16xf32>
    %157 = vector.shape_cast %156 : vector<1x1x16xf32> to vector<1x16xf32>
    %158 = vector.broadcast %157 : vector<1x16xf32> to vector<16x16xf32>
    %159 = arith.addf %155, %158 : vector<16x16xf32>
    %160 = vector.extract_strided_slice %98 {offsets = [5, 0, 0], sizes = [1, 32, 16], strides = [1, 1, 1]} : vector<6x32x16xbf16> to vector<1x32x16xbf16>
    %161 = vector.shape_cast %160 : vector<1x32x16xbf16> to vector<32x16xbf16>
    %cst_52 = arith.constant dense<0.000000e+00> : vector<16x16xf32>
    %162 = tpu.matmul %96, %161, %cst_52 {dimension_numbers = #tpu.dot_dimension_numbers<[1], [0], [0], [1], [0, 0, 1, 1], [], []>} : vector<16x32xbf16>, vector<32x16xbf16>, vector<16x16xf32> -> vector<16x16xf32>
    %163 = vector.extract_strided_slice %100 {offsets = [5, 0, 0], sizes = [1, 1, 16], strides = [1, 1, 1]} : vector<6x1x16xf32> to vector<1x1x16xf32>
    %164 = vector.shape_cast %163 : vector<1x1x16xf32> to vector<1x16xf32>
    %165 = vector.broadcast %164 : vector<1x16xf32> to vector<16x16xf32>
    %166 = arith.addf %162, %165 : vector<16x16xf32>
    %167 = arith.truncf %152 : vector<16x16xf32> to vector<16x16xbf16>
    %168 = arith.truncf %159 : vector<16x16xf32> to vector<16x16xbf16>
    %cst_53 = arith.constant dense<0.000000e+00> : vector<16x16xf32>
    %169 = tpu.matmul %167, %168, %cst_53 {dimension_numbers = #tpu.dot_dimension_numbers<[1], [1], [0], [0], [0, 0, 1, 0], [], []>} : vector<16x16xbf16>, vector<16x16xbf16>, vector<16x16xf32> -> vector<16x16xf32>
    %cst_54 = arith.constant 2.500000e-01 : f32
    %170 = vector.broadcast %cst_54 : f32 to vector<16x16xf32>
    %171 = arith.mulf %169, %170 : vector<16x16xf32>
    %172 = arith.addf %171, %95 : vector<16x16xf32>
    %cst_55 = arith.constant dense<0xFF800000> : vector<16xf32>
    %173 = vector.multi_reduction <maximumf>, %172, %cst_55 [1] : vector<16x16xf32> to vector<16xf32>
    %174 = vector.shape_cast %173 : vector<16xf32> to vector<16x1xf32>
    %175 = vector.broadcast %174 : vector<16x1xf32> to vector<16x16xf32>
    %176 = arith.subf %172, %175 : vector<16x16xf32>
    %177 = math.exp %176 : vector<16x16xf32>
    %cst_56 = arith.constant dense<0.000000e+00> : vector<16xf32>
    %178 = vector.multi_reduction <add>, %177, %cst_56 [1] : vector<16x16xf32> to vector<16xf32>
    %179 = vector.shape_cast %178 : vector<16xf32> to vector<16x1xf32>
    %180 = tpu.reciprocal %179 {approx = true} : vector<16x1xf32> -> vector<16x1xf32>
    %181 = vector.broadcast %180 : vector<16x1xf32> to vector<16x16xf32>
    %182 = arith.mulf %177, %181 : vector<16x16xf32>
    %183 = arith.truncf %182 : vector<16x16xf32> to vector<16x16xbf16>
    %184 = arith.truncf %166 : vector<16x16xf32> to vector<16x16xbf16>
    %cst_57 = arith.constant dense<0.000000e+00> : vector<16x16xf32>
    %185 = tpu.matmul %183, %184, %cst_57 {dimension_numbers = #tpu.dot_dimension_numbers<[1], [0], [0], [1], [0, 0, 1, 1], [], []>} : vector<16x16xbf16>, vector<16x16xbf16>, vector<16x16xf32> -> vector<16x16xf32>
    %186 = arith.truncf %185 : vector<16x16xf32> to vector<16x16xbf16>
    %187 = vector.extract_strided_slice %102 {offsets = [16, 0], sizes = [16, 32], strides = [1, 1]} : vector<32x32xbf16> to vector<16x32xbf16>
    %cst_58 = arith.constant dense<0.000000e+00> : vector<16x32xf32>
    %188 = tpu.matmul %186, %187, %cst_58 {dimension_numbers = #tpu.dot_dimension_numbers<[1], [0], [0], [1], [0, 0, 1, 1], [], []>} : vector<16x16xbf16>, vector<16x32xbf16>, vector<16x32xf32> -> vector<16x32xf32>
    %189 = arith.addf %145, %188 : vector<16x32xf32>
    %c2 = arith.constant 2 : index
    %c0_59 = arith.constant 0 : index
    %c0_60 = arith.constant 0 : index
    %190 = vector.load %arg4[%c2, %c0_59, %c0_60] : memref<14x1x32xf32, #tpu.memory_space<vmem>>, vector<1x1x32xf32>
    %191 = vector.shape_cast %190 : vector<1x1x32xf32> to vector<1x32xf32>
    %192 = vector.broadcast %191 : vector<1x32xf32> to vector<16x32xf32>
    %193 = arith.addf %189, %192 : vector<16x32xf32>
    %194 = arith.addf %88, %193 : vector<16x32xf32>
    %c3 = arith.constant 3 : index
    %c0_61 = arith.constant 0 : index
    %c0_62 = arith.constant 0 : index
    %195 = vector.load %arg4[%c3, %c0_61, %c0_62] : memref<14x1x32xf32, #tpu.memory_space<vmem>>, vector<1x1x32xf32>
    %196 = vector.shape_cast %195 : vector<1x1x32xf32> to vector<1x32xf32>
    %c4 = arith.constant 4 : index
    %c0_63 = arith.constant 0 : index
    %c0_64 = arith.constant 0 : index
    %197 = vector.load %arg4[%c4, %c0_63, %c0_64] : memref<14x1x32xf32, #tpu.memory_space<vmem>>, vector<1x1x32xf32>
    %198 = vector.shape_cast %197 : vector<1x1x32xf32> to vector<1x32xf32>
    %cst_65 = arith.constant dense<0.000000e+00> : vector<16xf32>
    %199 = vector.multi_reduction <add>, %194, %cst_65 [1] : vector<16x32xf32> to vector<16xf32>
    %200 = vector.shape_cast %199 : vector<16xf32> to vector<16x1xf32>
    %cst_66 = arith.constant 3.200000e+01 : f32
    %201 = vector.broadcast %cst_66 : f32 to vector<16x1xf32>
    %202 = arith.divf %200, %201 : vector<16x1xf32>
    %203 = arith.mulf %194, %194 : vector<16x32xf32>
    %cst_67 = arith.constant dense<0.000000e+00> : vector<16xf32>
    %204 = vector.multi_reduction <add>, %203, %cst_67 [1] : vector<16x32xf32> to vector<16xf32>
    %205 = vector.shape_cast %204 : vector<16xf32> to vector<16x1xf32>
    %cst_68 = arith.constant 3.200000e+01 : f32
    %206 = vector.broadcast %cst_68 : f32 to vector<16x1xf32>
    %207 = arith.divf %205, %206 : vector<16x1xf32>
    %208 = arith.mulf %202, %202 : vector<16x1xf32>
    %209 = arith.subf %207, %208 : vector<16x1xf32>
    %210 = vector.broadcast %202 : vector<16x1xf32> to vector<16x32xf32>
    %211 = arith.subf %194, %210 : vector<16x32xf32>
    %cst_69 = arith.constant 9.99999974E-6 : f32
    %212 = vector.broadcast %cst_69 : f32 to vector<16x1xf32>
    %213 = arith.addf %209, %212 : vector<16x1xf32>
    %214 = math.rsqrt %213 : vector<16x1xf32>
    %215 = vector.broadcast %214 : vector<16x1xf32> to vector<16x32xf32>
    %216 = arith.mulf %211, %215 : vector<16x32xf32>
    %217 = vector.broadcast %196 : vector<1x32xf32> to vector<16x32xf32>
    %218 = arith.mulf %216, %217 : vector<16x32xf32>
    %219 = vector.broadcast %198 : vector<1x32xf32> to vector<16x32xf32>
    %220 = arith.addf %218, %219 : vector<16x32xf32>
    %221 = arith.truncf %220 : vector<16x32xf32> to vector<16x32xbf16>
    %c0_70 = arith.constant 0 : index
    %c0_71 = arith.constant 0 : index
    %c0_72 = arith.constant 0 : index
    %222 = vector.load %arg9[%c0_70, %c0_71, %c0_72] : memref<2x32x64xbf16, #tpu.memory_space<vmem>>, vector<1x32x64xbf16>
    %223 = vector.shape_cast %222 : vector<1x32x64xbf16> to vector<32x64xbf16>
    %cst_73 = arith.constant dense<0.000000e+00> : vector<16x64xf32>
    %224 = tpu.matmul %221, %223, %cst_73 {dimension_numbers = #tpu.dot_dimension_numbers<[1], [0], [0], [1], [0, 0, 1, 1], [], []>} : vector<16x32xbf16>, vector<32x64xbf16>, vector<16x64xf32> -> vector<16x64xf32>
    %c0_74 = arith.constant 0 : index
    %c0_75 = arith.constant 0 : index
    %c0_76 = arith.constant 0 : index
    %225 = vector.load %arg6[%c0_74, %c0_75, %c0_76] : memref<2x1x64xf32, #tpu.memory_space<vmem>>, vector<1x1x64xf32>
    %226 = vector.shape_cast %225 : vector<1x1x64xf32> to vector<1x64xf32>
    %227 = vector.broadcast %226 : vector<1x64xf32> to vector<16x64xf32>
    %228 = arith.addf %224, %227 : vector<16x64xf32>
    %cst_77 = arith.constant 5.000000e-01 : f32
    %229 = vector.broadcast %cst_77 : f32 to vector<16x64xf32>
    %230 = arith.mulf %229, %228 : vector<16x64xf32>
    %cst_78 = arith.constant 4.471500e-02 : f32
    %231 = vector.broadcast %cst_78 : f32 to vector<16x64xf32>
    %232 = arith.mulf %231, %228 : vector<16x64xf32>
    %233 = arith.mulf %232, %228 : vector<16x64xf32>
    %234 = arith.mulf %233, %228 : vector<16x64xf32>
    %235 = arith.addf %228, %234 : vector<16x64xf32>
    %cst_79 = arith.constant 0.797884583 : f32
    %236 = vector.broadcast %cst_79 : f32 to vector<16x64xf32>
    %237 = arith.mulf %236, %235 : vector<16x64xf32>
    %238 = math.tanh %237 : vector<16x64xf32>
    %cst_80 = arith.constant 1.000000e+00 : f32
    %239 = vector.broadcast %cst_80 : f32 to vector<16x64xf32>
    %240 = arith.addf %239, %238 : vector<16x64xf32>
    %241 = arith.mulf %230, %240 : vector<16x64xf32>
    %242 = arith.truncf %241 : vector<16x64xf32> to vector<16x64xbf16>
    %c0_81 = arith.constant 0 : index
    %c0_82 = arith.constant 0 : index
    %c0_83 = arith.constant 0 : index
    %243 = vector.load %arg10[%c0_81, %c0_82, %c0_83] : memref<2x64x32xbf16, #tpu.memory_space<vmem>>, vector<1x64x32xbf16>
    %244 = vector.shape_cast %243 : vector<1x64x32xbf16> to vector<64x32xbf16>
    %cst_84 = arith.constant dense<0.000000e+00> : vector<16x32xf32>
    %245 = tpu.matmul %242, %244, %cst_84 {dimension_numbers = #tpu.dot_dimension_numbers<[1], [0], [0], [1], [0, 0, 1, 1], [], []>} : vector<16x64xbf16>, vector<64x32xbf16>, vector<16x32xf32> -> vector<16x32xf32>
    %c5 = arith.constant 5 : index
    %c0_85 = arith.constant 0 : index
    %c0_86 = arith.constant 0 : index
    %246 = vector.load %arg4[%c5, %c0_85, %c0_86] : memref<14x1x32xf32, #tpu.memory_space<vmem>>, vector<1x1x32xf32>
    %247 = vector.shape_cast %246 : vector<1x1x32xf32> to vector<1x32xf32>
    %248 = vector.broadcast %247 : vector<1x32xf32> to vector<16x32xf32>
    %249 = arith.addf %245, %248 : vector<16x32xf32>
    %250 = arith.addf %220, %249 : vector<16x32xf32>
    %c6 = arith.constant 6 : index
    %c0_87 = arith.constant 0 : index
    %c0_88 = arith.constant 0 : index
    %251 = vector.load %arg4[%c6, %c0_87, %c0_88] : memref<14x1x32xf32, #tpu.memory_space<vmem>>, vector<1x1x32xf32>
    %252 = vector.shape_cast %251 : vector<1x1x32xf32> to vector<1x32xf32>
    %c7 = arith.constant 7 : index
    %c0_89 = arith.constant 0 : index
    %c0_90 = arith.constant 0 : index
    %253 = vector.load %arg4[%c7, %c0_89, %c0_90] : memref<14x1x32xf32, #tpu.memory_space<vmem>>, vector<1x1x32xf32>
    %254 = vector.shape_cast %253 : vector<1x1x32xf32> to vector<1x32xf32>
    %cst_91 = arith.constant dense<0.000000e+00> : vector<16xf32>
    %255 = vector.multi_reduction <add>, %250, %cst_91 [1] : vector<16x32xf32> to vector<16xf32>
    %256 = vector.shape_cast %255 : vector<16xf32> to vector<16x1xf32>
    %cst_92 = arith.constant 3.200000e+01 : f32
    %257 = vector.broadcast %cst_92 : f32 to vector<16x1xf32>
    %258 = arith.divf %256, %257 : vector<16x1xf32>
    %259 = arith.mulf %250, %250 : vector<16x32xf32>
    %cst_93 = arith.constant dense<0.000000e+00> : vector<16xf32>
    %260 = vector.multi_reduction <add>, %259, %cst_93 [1] : vector<16x32xf32> to vector<16xf32>
    %261 = vector.shape_cast %260 : vector<16xf32> to vector<16x1xf32>
    %cst_94 = arith.constant 3.200000e+01 : f32
    %262 = vector.broadcast %cst_94 : f32 to vector<16x1xf32>
    %263 = arith.divf %261, %262 : vector<16x1xf32>
    %264 = arith.mulf %258, %258 : vector<16x1xf32>
    %265 = arith.subf %263, %264 : vector<16x1xf32>
    %266 = vector.broadcast %258 : vector<16x1xf32> to vector<16x32xf32>
    %267 = arith.subf %250, %266 : vector<16x32xf32>
    %cst_95 = arith.constant 9.99999974E-6 : f32
    %268 = vector.broadcast %cst_95 : f32 to vector<16x1xf32>
    %269 = arith.addf %265, %268 : vector<16x1xf32>
    %270 = math.rsqrt %269 : vector<16x1xf32>
    %271 = vector.broadcast %270 : vector<16x1xf32> to vector<16x32xf32>
    %272 = arith.mulf %267, %271 : vector<16x32xf32>
    %273 = vector.broadcast %252 : vector<1x32xf32> to vector<16x32xf32>
    %274 = arith.mulf %272, %273 : vector<16x32xf32>
    %275 = vector.broadcast %254 : vector<1x32xf32> to vector<16x32xf32>
    %276 = arith.addf %274, %275 : vector<16x32xf32>
    %277 = arith.truncf %276 : vector<16x32xf32> to vector<16x32xbf16>
    %c1_96 = arith.constant 1 : index
    %c0_97 = arith.constant 0 : index
    %c0_98 = arith.constant 0 : index
    %c0_99 = arith.constant 0 : index
    %278 = vector.load %arg7[%c1_96, %c0_97, %c0_98, %c0_99] : memref<2x6x32x16xbf16, #tpu.memory_space<vmem>>, vector<1x6x32x16xbf16>
    %279 = vector.shape_cast %278 : vector<1x6x32x16xbf16> to vector<6x32x16xbf16>
    %c1_100 = arith.constant 1 : index
    %c0_101 = arith.constant 0 : index
    %c0_102 = arith.constant 0 : index
    %c0_103 = arith.constant 0 : index
    %280 = vector.load %arg5[%c1_100, %c0_101, %c0_102, %c0_103] : memref<2x6x1x16xf32, #tpu.memory_space<vmem>>, vector<1x6x1x16xf32>
    %281 = vector.shape_cast %280 : vector<1x6x1x16xf32> to vector<6x1x16xf32>
    %c1_104 = arith.constant 1 : index
    %c0_105 = arith.constant 0 : index
    %c0_106 = arith.constant 0 : index
    %282 = vector.load %arg8[%c1_104, %c0_105, %c0_106] : memref<2x32x32xbf16, #tpu.memory_space<vmem>>, vector<1x32x32xbf16>
    %283 = vector.shape_cast %282 : vector<1x32x32xbf16> to vector<32x32xbf16>
    %284 = vector.extract_strided_slice %279 {offsets = [0, 0, 0], sizes = [1, 32, 16], strides = [1, 1, 1]} : vector<6x32x16xbf16> to vector<1x32x16xbf16>
    %285 = vector.shape_cast %284 : vector<1x32x16xbf16> to vector<32x16xbf16>
    %cst_107 = arith.constant dense<0.000000e+00> : vector<16x16xf32>
    %286 = tpu.matmul %277, %285, %cst_107 {dimension_numbers = #tpu.dot_dimension_numbers<[1], [0], [0], [1], [0, 0, 1, 1], [], []>} : vector<16x32xbf16>, vector<32x16xbf16>, vector<16x16xf32> -> vector<16x16xf32>
    %287 = vector.extract_strided_slice %281 {offsets = [0, 0, 0], sizes = [1, 1, 16], strides = [1, 1, 1]} : vector<6x1x16xf32> to vector<1x1x16xf32>
    %288 = vector.shape_cast %287 : vector<1x1x16xf32> to vector<1x16xf32>
    %289 = vector.broadcast %288 : vector<1x16xf32> to vector<16x16xf32>
    %290 = arith.addf %286, %289 : vector<16x16xf32>
    %291 = vector.extract_strided_slice %279 {offsets = [2, 0, 0], sizes = [1, 32, 16], strides = [1, 1, 1]} : vector<6x32x16xbf16> to vector<1x32x16xbf16>
    %292 = vector.shape_cast %291 : vector<1x32x16xbf16> to vector<32x16xbf16>
    %cst_108 = arith.constant dense<0.000000e+00> : vector<16x16xf32>
    %293 = tpu.matmul %277, %292, %cst_108 {dimension_numbers = #tpu.dot_dimension_numbers<[1], [0], [0], [1], [0, 0, 1, 1], [], []>} : vector<16x32xbf16>, vector<32x16xbf16>, vector<16x16xf32> -> vector<16x16xf32>
    %294 = vector.extract_strided_slice %281 {offsets = [2, 0, 0], sizes = [1, 1, 16], strides = [1, 1, 1]} : vector<6x1x16xf32> to vector<1x1x16xf32>
    %295 = vector.shape_cast %294 : vector<1x1x16xf32> to vector<1x16xf32>
    %296 = vector.broadcast %295 : vector<1x16xf32> to vector<16x16xf32>
    %297 = arith.addf %293, %296 : vector<16x16xf32>
    %298 = vector.extract_strided_slice %279 {offsets = [4, 0, 0], sizes = [1, 32, 16], strides = [1, 1, 1]} : vector<6x32x16xbf16> to vector<1x32x16xbf16>
    %299 = vector.shape_cast %298 : vector<1x32x16xbf16> to vector<32x16xbf16>
    %cst_109 = arith.constant dense<0.000000e+00> : vector<16x16xf32>
    %300 = tpu.matmul %277, %299, %cst_109 {dimension_numbers = #tpu.dot_dimension_numbers<[1], [0], [0], [1], [0, 0, 1, 1], [], []>} : vector<16x32xbf16>, vector<32x16xbf16>, vector<16x16xf32> -> vector<16x16xf32>
    %301 = vector.extract_strided_slice %281 {offsets = [4, 0, 0], sizes = [1, 1, 16], strides = [1, 1, 1]} : vector<6x1x16xf32> to vector<1x1x16xf32>
    %302 = vector.shape_cast %301 : vector<1x1x16xf32> to vector<1x16xf32>
    %303 = vector.broadcast %302 : vector<1x16xf32> to vector<16x16xf32>
    %304 = arith.addf %300, %303 : vector<16x16xf32>
    %305 = arith.truncf %290 : vector<16x16xf32> to vector<16x16xbf16>
    %306 = arith.truncf %297 : vector<16x16xf32> to vector<16x16xbf16>
    %cst_110 = arith.constant dense<0.000000e+00> : vector<16x16xf32>
    %307 = tpu.matmul %305, %306, %cst_110 {dimension_numbers = #tpu.dot_dimension_numbers<[1], [1], [0], [0], [0, 0, 1, 0], [], []>} : vector<16x16xbf16>, vector<16x16xbf16>, vector<16x16xf32> -> vector<16x16xf32>
    %cst_111 = arith.constant 2.500000e-01 : f32
    %308 = vector.broadcast %cst_111 : f32 to vector<16x16xf32>
    %309 = arith.mulf %307, %308 : vector<16x16xf32>
    %310 = arith.addf %309, %95 : vector<16x16xf32>
    %cst_112 = arith.constant dense<0xFF800000> : vector<16xf32>
    %311 = vector.multi_reduction <maximumf>, %310, %cst_112 [1] : vector<16x16xf32> to vector<16xf32>
    %312 = vector.shape_cast %311 : vector<16xf32> to vector<16x1xf32>
    %313 = vector.broadcast %312 : vector<16x1xf32> to vector<16x16xf32>
    %314 = arith.subf %310, %313 : vector<16x16xf32>
    %315 = math.exp %314 : vector<16x16xf32>
    %cst_113 = arith.constant dense<0.000000e+00> : vector<16xf32>
    %316 = vector.multi_reduction <add>, %315, %cst_113 [1] : vector<16x16xf32> to vector<16xf32>
    %317 = vector.shape_cast %316 : vector<16xf32> to vector<16x1xf32>
    %318 = tpu.reciprocal %317 {approx = true} : vector<16x1xf32> -> vector<16x1xf32>
    %319 = vector.broadcast %318 : vector<16x1xf32> to vector<16x16xf32>
    %320 = arith.mulf %315, %319 : vector<16x16xf32>
    %321 = arith.truncf %320 : vector<16x16xf32> to vector<16x16xbf16>
    %322 = arith.truncf %304 : vector<16x16xf32> to vector<16x16xbf16>
    %cst_114 = arith.constant dense<0.000000e+00> : vector<16x16xf32>
    %323 = tpu.matmul %321, %322, %cst_114 {dimension_numbers = #tpu.dot_dimension_numbers<[1], [0], [0], [1], [0, 0, 1, 1], [], []>} : vector<16x16xbf16>, vector<16x16xbf16>, vector<16x16xf32> -> vector<16x16xf32>
    %324 = arith.truncf %323 : vector<16x16xf32> to vector<16x16xbf16>
    %325 = vector.extract_strided_slice %283 {offsets = [0, 0], sizes = [16, 32], strides = [1, 1]} : vector<32x32xbf16> to vector<16x32xbf16>
    %cst_115 = arith.constant dense<0.000000e+00> : vector<16x32xf32>
    %326 = tpu.matmul %324, %325, %cst_115 {dimension_numbers = #tpu.dot_dimension_numbers<[1], [0], [0], [1], [0, 0, 1, 1], [], []>} : vector<16x16xbf16>, vector<16x32xbf16>, vector<16x32xf32> -> vector<16x32xf32>
    %327 = vector.extract_strided_slice %279 {offsets = [1, 0, 0], sizes = [1, 32, 16], strides = [1, 1, 1]} : vector<6x32x16xbf16> to vector<1x32x16xbf16>
    %328 = vector.shape_cast %327 : vector<1x32x16xbf16> to vector<32x16xbf16>
    %cst_116 = arith.constant dense<0.000000e+00> : vector<16x16xf32>
    %329 = tpu.matmul %277, %328, %cst_116 {dimension_numbers = #tpu.dot_dimension_numbers<[1], [0], [0], [1], [0, 0, 1, 1], [], []>} : vector<16x32xbf16>, vector<32x16xbf16>, vector<16x16xf32> -> vector<16x16xf32>
    %330 = vector.extract_strided_slice %281 {offsets = [1, 0, 0], sizes = [1, 1, 16], strides = [1, 1, 1]} : vector<6x1x16xf32> to vector<1x1x16xf32>
    %331 = vector.shape_cast %330 : vector<1x1x16xf32> to vector<1x16xf32>
    %332 = vector.broadcast %331 : vector<1x16xf32> to vector<16x16xf32>
    %333 = arith.addf %329, %332 : vector<16x16xf32>
    %334 = vector.extract_strided_slice %279 {offsets = [3, 0, 0], sizes = [1, 32, 16], strides = [1, 1, 1]} : vector<6x32x16xbf16> to vector<1x32x16xbf16>
    %335 = vector.shape_cast %334 : vector<1x32x16xbf16> to vector<32x16xbf16>
    %cst_117 = arith.constant dense<0.000000e+00> : vector<16x16xf32>
    %336 = tpu.matmul %277, %335, %cst_117 {dimension_numbers = #tpu.dot_dimension_numbers<[1], [0], [0], [1], [0, 0, 1, 1], [], []>} : vector<16x32xbf16>, vector<32x16xbf16>, vector<16x16xf32> -> vector<16x16xf32>
    %337 = vector.extract_strided_slice %281 {offsets = [3, 0, 0], sizes = [1, 1, 16], strides = [1, 1, 1]} : vector<6x1x16xf32> to vector<1x1x16xf32>
    %338 = vector.shape_cast %337 : vector<1x1x16xf32> to vector<1x16xf32>
    %339 = vector.broadcast %338 : vector<1x16xf32> to vector<16x16xf32>
    %340 = arith.addf %336, %339 : vector<16x16xf32>
    %341 = vector.extract_strided_slice %279 {offsets = [5, 0, 0], sizes = [1, 32, 16], strides = [1, 1, 1]} : vector<6x32x16xbf16> to vector<1x32x16xbf16>
    %342 = vector.shape_cast %341 : vector<1x32x16xbf16> to vector<32x16xbf16>
    %cst_118 = arith.constant dense<0.000000e+00> : vector<16x16xf32>
    %343 = tpu.matmul %277, %342, %cst_118 {dimension_numbers = #tpu.dot_dimension_numbers<[1], [0], [0], [1], [0, 0, 1, 1], [], []>} : vector<16x32xbf16>, vector<32x16xbf16>, vector<16x16xf32> -> vector<16x16xf32>
    %344 = vector.extract_strided_slice %281 {offsets = [5, 0, 0], sizes = [1, 1, 16], strides = [1, 1, 1]} : vector<6x1x16xf32> to vector<1x1x16xf32>
    %345 = vector.shape_cast %344 : vector<1x1x16xf32> to vector<1x16xf32>
    %346 = vector.broadcast %345 : vector<1x16xf32> to vector<16x16xf32>
    %347 = arith.addf %343, %346 : vector<16x16xf32>
    %348 = arith.truncf %333 : vector<16x16xf32> to vector<16x16xbf16>
    %349 = arith.truncf %340 : vector<16x16xf32> to vector<16x16xbf16>
    %cst_119 = arith.constant dense<0.000000e+00> : vector<16x16xf32>
    %350 = tpu.matmul %348, %349, %cst_119 {dimension_numbers = #tpu.dot_dimension_numbers<[1], [1], [0], [0], [0, 0, 1, 0], [], []>} : vector<16x16xbf16>, vector<16x16xbf16>, vector<16x16xf32> -> vector<16x16xf32>
    %cst_120 = arith.constant 2.500000e-01 : f32
    %351 = vector.broadcast %cst_120 : f32 to vector<16x16xf32>
    %352 = arith.mulf %350, %351 : vector<16x16xf32>
    %353 = arith.addf %352, %95 : vector<16x16xf32>
    %cst_121 = arith.constant dense<0xFF800000> : vector<16xf32>
    %354 = vector.multi_reduction <maximumf>, %353, %cst_121 [1] : vector<16x16xf32> to vector<16xf32>
    %355 = vector.shape_cast %354 : vector<16xf32> to vector<16x1xf32>
    %356 = vector.broadcast %355 : vector<16x1xf32> to vector<16x16xf32>
    %357 = arith.subf %353, %356 : vector<16x16xf32>
    %358 = math.exp %357 : vector<16x16xf32>
    %cst_122 = arith.constant dense<0.000000e+00> : vector<16xf32>
    %359 = vector.multi_reduction <add>, %358, %cst_122 [1] : vector<16x16xf32> to vector<16xf32>
    %360 = vector.shape_cast %359 : vector<16xf32> to vector<16x1xf32>
    %361 = tpu.reciprocal %360 {approx = true} : vector<16x1xf32> -> vector<16x1xf32>
    %362 = vector.broadcast %361 : vector<16x1xf32> to vector<16x16xf32>
    %363 = arith.mulf %358, %362 : vector<16x16xf32>
    %364 = arith.truncf %363 : vector<16x16xf32> to vector<16x16xbf16>
    %365 = arith.truncf %347 : vector<16x16xf32> to vector<16x16xbf16>
    %cst_123 = arith.constant dense<0.000000e+00> : vector<16x16xf32>
    %366 = tpu.matmul %364, %365, %cst_123 {dimension_numbers = #tpu.dot_dimension_numbers<[1], [0], [0], [1], [0, 0, 1, 1], [], []>} : vector<16x16xbf16>, vector<16x16xbf16>, vector<16x16xf32> -> vector<16x16xf32>
    %367 = arith.truncf %366 : vector<16x16xf32> to vector<16x16xbf16>
    %368 = vector.extract_strided_slice %283 {offsets = [16, 0], sizes = [16, 32], strides = [1, 1]} : vector<32x32xbf16> to vector<16x32xbf16>
    %cst_124 = arith.constant dense<0.000000e+00> : vector<16x32xf32>
    %369 = tpu.matmul %367, %368, %cst_124 {dimension_numbers = #tpu.dot_dimension_numbers<[1], [0], [0], [1], [0, 0, 1, 1], [], []>} : vector<16x16xbf16>, vector<16x32xbf16>, vector<16x32xf32> -> vector<16x32xf32>
    %370 = arith.addf %326, %369 : vector<16x32xf32>
    %c8 = arith.constant 8 : index
    %c0_125 = arith.constant 0 : index
    %c0_126 = arith.constant 0 : index
    %371 = vector.load %arg4[%c8, %c0_125, %c0_126] : memref<14x1x32xf32, #tpu.memory_space<vmem>>, vector<1x1x32xf32>
    %372 = vector.shape_cast %371 : vector<1x1x32xf32> to vector<1x32xf32>
    %373 = vector.broadcast %372 : vector<1x32xf32> to vector<16x32xf32>
    %374 = arith.addf %370, %373 : vector<16x32xf32>
    %375 = arith.addf %276, %374 : vector<16x32xf32>
    %c9 = arith.constant 9 : index
    %c0_127 = arith.constant 0 : index
    %c0_128 = arith.constant 0 : index
    %376 = vector.load %arg4[%c9, %c0_127, %c0_128] : memref<14x1x32xf32, #tpu.memory_space<vmem>>, vector<1x1x32xf32>
    %377 = vector.shape_cast %376 : vector<1x1x32xf32> to vector<1x32xf32>
    %c10 = arith.constant 10 : index
    %c0_129 = arith.constant 0 : index
    %c0_130 = arith.constant 0 : index
    %378 = vector.load %arg4[%c10, %c0_129, %c0_130] : memref<14x1x32xf32, #tpu.memory_space<vmem>>, vector<1x1x32xf32>
    %379 = vector.shape_cast %378 : vector<1x1x32xf32> to vector<1x32xf32>
    %cst_131 = arith.constant dense<0.000000e+00> : vector<16xf32>
    %380 = vector.multi_reduction <add>, %375, %cst_131 [1] : vector<16x32xf32> to vector<16xf32>
    %381 = vector.shape_cast %380 : vector<16xf32> to vector<16x1xf32>
    %cst_132 = arith.constant 3.200000e+01 : f32
    %382 = vector.broadcast %cst_132 : f32 to vector<16x1xf32>
    %383 = arith.divf %381, %382 : vector<16x1xf32>
    %384 = arith.mulf %375, %375 : vector<16x32xf32>
    %cst_133 = arith.constant dense<0.000000e+00> : vector<16xf32>
    %385 = vector.multi_reduction <add>, %384, %cst_133 [1] : vector<16x32xf32> to vector<16xf32>
    %386 = vector.shape_cast %385 : vector<16xf32> to vector<16x1xf32>
    %cst_134 = arith.constant 3.200000e+01 : f32
    %387 = vector.broadcast %cst_134 : f32 to vector<16x1xf32>
    %388 = arith.divf %386, %387 : vector<16x1xf32>
    %389 = arith.mulf %383, %383 : vector<16x1xf32>
    %390 = arith.subf %388, %389 : vector<16x1xf32>
    %391 = vector.broadcast %383 : vector<16x1xf32> to vector<16x32xf32>
    %392 = arith.subf %375, %391 : vector<16x32xf32>
    %cst_135 = arith.constant 9.99999974E-6 : f32
    %393 = vector.broadcast %cst_135 : f32 to vector<16x1xf32>
    %394 = arith.addf %390, %393 : vector<16x1xf32>
    %395 = math.rsqrt %394 : vector<16x1xf32>
    %396 = vector.broadcast %395 : vector<16x1xf32> to vector<16x32xf32>
    %397 = arith.mulf %392, %396 : vector<16x32xf32>
    %398 = vector.broadcast %377 : vector<1x32xf32> to vector<16x32xf32>
    %399 = arith.mulf %397, %398 : vector<16x32xf32>
    %400 = vector.broadcast %379 : vector<1x32xf32> to vector<16x32xf32>
    %401 = arith.addf %399, %400 : vector<16x32xf32>
    %402 = arith.truncf %401 : vector<16x32xf32> to vector<16x32xbf16>
    %c1_136 = arith.constant 1 : index
    %c0_137 = arith.constant 0 : index
    %c0_138 = arith.constant 0 : index
    %403 = vector.load %arg9[%c1_136, %c0_137, %c0_138] : memref<2x32x64xbf16, #tpu.memory_space<vmem>>, vector<1x32x64xbf16>
    %404 = vector.shape_cast %403 : vector<1x32x64xbf16> to vector<32x64xbf16>
    %cst_139 = arith.constant dense<0.000000e+00> : vector<16x64xf32>
    %405 = tpu.matmul %402, %404, %cst_139 {dimension_numbers = #tpu.dot_dimension_numbers<[1], [0], [0], [1], [0, 0, 1, 1], [], []>} : vector<16x32xbf16>, vector<32x64xbf16>, vector<16x64xf32> -> vector<16x64xf32>
    %c1_140 = arith.constant 1 : index
    %c0_141 = arith.constant 0 : index
    %c0_142 = arith.constant 0 : index
    %406 = vector.load %arg6[%c1_140, %c0_141, %c0_142] : memref<2x1x64xf32, #tpu.memory_space<vmem>>, vector<1x1x64xf32>
    %407 = vector.shape_cast %406 : vector<1x1x64xf32> to vector<1x64xf32>
    %408 = vector.broadcast %407 : vector<1x64xf32> to vector<16x64xf32>
    %409 = arith.addf %405, %408 : vector<16x64xf32>
    %cst_143 = arith.constant 5.000000e-01 : f32
    %410 = vector.broadcast %cst_143 : f32 to vector<16x64xf32>
    %411 = arith.mulf %410, %409 : vector<16x64xf32>
    %cst_144 = arith.constant 4.471500e-02 : f32
    %412 = vector.broadcast %cst_144 : f32 to vector<16x64xf32>
    %413 = arith.mulf %412, %409 : vector<16x64xf32>
    %414 = arith.mulf %413, %409 : vector<16x64xf32>
    %415 = arith.mulf %414, %409 : vector<16x64xf32>
    %416 = arith.addf %409, %415 : vector<16x64xf32>
    %cst_145 = arith.constant 0.797884583 : f32
    %417 = vector.broadcast %cst_145 : f32 to vector<16x64xf32>
    %418 = arith.mulf %417, %416 : vector<16x64xf32>
    %419 = math.tanh %418 : vector<16x64xf32>
    %cst_146 = arith.constant 1.000000e+00 : f32
    %420 = vector.broadcast %cst_146 : f32 to vector<16x64xf32>
    %421 = arith.addf %420, %419 : vector<16x64xf32>
    %422 = arith.mulf %411, %421 : vector<16x64xf32>
    %423 = arith.truncf %422 : vector<16x64xf32> to vector<16x64xbf16>
    %c1_147 = arith.constant 1 : index
    %c0_148 = arith.constant 0 : index
    %c0_149 = arith.constant 0 : index
    %424 = vector.load %arg10[%c1_147, %c0_148, %c0_149] : memref<2x64x32xbf16, #tpu.memory_space<vmem>>, vector<1x64x32xbf16>
    %425 = vector.shape_cast %424 : vector<1x64x32xbf16> to vector<64x32xbf16>
    %cst_150 = arith.constant dense<0.000000e+00> : vector<16x32xf32>
    %426 = tpu.matmul %423, %425, %cst_150 {dimension_numbers = #tpu.dot_dimension_numbers<[1], [0], [0], [1], [0, 0, 1, 1], [], []>} : vector<16x64xbf16>, vector<64x32xbf16>, vector<16x32xf32> -> vector<16x32xf32>
    %c11 = arith.constant 11 : index
    %c0_151 = arith.constant 0 : index
    %c0_152 = arith.constant 0 : index
    %427 = vector.load %arg4[%c11, %c0_151, %c0_152] : memref<14x1x32xf32, #tpu.memory_space<vmem>>, vector<1x1x32xf32>
    %428 = vector.shape_cast %427 : vector<1x1x32xf32> to vector<1x32xf32>
    %429 = vector.broadcast %428 : vector<1x32xf32> to vector<16x32xf32>
    %430 = arith.addf %426, %429 : vector<16x32xf32>
    %431 = arith.addf %401, %430 : vector<16x32xf32>
    %c12 = arith.constant 12 : index
    %c0_153 = arith.constant 0 : index
    %c0_154 = arith.constant 0 : index
    %432 = vector.load %arg4[%c12, %c0_153, %c0_154] : memref<14x1x32xf32, #tpu.memory_space<vmem>>, vector<1x1x32xf32>
    %433 = vector.shape_cast %432 : vector<1x1x32xf32> to vector<1x32xf32>
    %c13 = arith.constant 13 : index
    %c0_155 = arith.constant 0 : index
    %c0_156 = arith.constant 0 : index
    %434 = vector.load %arg4[%c13, %c0_155, %c0_156] : memref<14x1x32xf32, #tpu.memory_space<vmem>>, vector<1x1x32xf32>
    %435 = vector.shape_cast %434 : vector<1x1x32xf32> to vector<1x32xf32>
    %cst_157 = arith.constant dense<0.000000e+00> : vector<16xf32>
    %436 = vector.multi_reduction <add>, %431, %cst_157 [1] : vector<16x32xf32> to vector<16xf32>
    %437 = vector.shape_cast %436 : vector<16xf32> to vector<16x1xf32>
    %cst_158 = arith.constant 3.200000e+01 : f32
    %438 = vector.broadcast %cst_158 : f32 to vector<16x1xf32>
    %439 = arith.divf %437, %438 : vector<16x1xf32>
    %440 = arith.mulf %431, %431 : vector<16x32xf32>
    %cst_159 = arith.constant dense<0.000000e+00> : vector<16xf32>
    %441 = vector.multi_reduction <add>, %440, %cst_159 [1] : vector<16x32xf32> to vector<16xf32>
    %442 = vector.shape_cast %441 : vector<16xf32> to vector<16x1xf32>
    %cst_160 = arith.constant 3.200000e+01 : f32
    %443 = vector.broadcast %cst_160 : f32 to vector<16x1xf32>
    %444 = arith.divf %442, %443 : vector<16x1xf32>
    %445 = arith.mulf %439, %439 : vector<16x1xf32>
    %446 = arith.subf %444, %445 : vector<16x1xf32>
    %447 = vector.broadcast %439 : vector<16x1xf32> to vector<16x32xf32>
    %448 = arith.subf %431, %447 : vector<16x32xf32>
    %cst_161 = arith.constant 9.99999974E-6 : f32
    %449 = vector.broadcast %cst_161 : f32 to vector<16x1xf32>
    %450 = arith.addf %446, %449 : vector<16x1xf32>
    %451 = math.rsqrt %450 : vector<16x1xf32>
    %452 = vector.broadcast %451 : vector<16x1xf32> to vector<16x32xf32>
    %453 = arith.mulf %448, %452 : vector<16x32xf32>
    %454 = vector.broadcast %433 : vector<1x32xf32> to vector<16x32xf32>
    %455 = arith.mulf %453, %454 : vector<16x32xf32>
    %456 = vector.broadcast %435 : vector<1x32xf32> to vector<16x32xf32>
    %457 = arith.addf %455, %456 : vector<16x32xf32>
    %458 = arith.sitofp %7 : vector<1x16xi32> to vector<1x16xbf16>
    %cst_162 = arith.constant dense<0.000000e+00> : vector<1x16xf32>
    %459 = tpu.matmul %458, %24, %cst_162 {dimension_numbers = #tpu.dot_dimension_numbers<[1], [0], [0], [1], [0, 0, 1, 1], [], []>} : vector<1x16xbf16>, vector<16x16xbf16>, vector<1x16xf32> -> vector<1x16xf32>
    %460 = arith.fptosi %459 : vector<1x16xf32> to vector<1x16xi32>
    %c1_i32_163 = arith.constant 1 : i32
    %461 = vector.broadcast %c1_i32_163 : i32 to vector<1x16xi32>
    %462 = arith.subi %460, %461 : vector<1x16xi32>
    %c7_i32 = arith.constant 7 : i32
    %463 = vector.broadcast %c7_i32 : i32 to vector<16x16xi32>
    %464 = arith.andi %8, %463 : vector<16x16xi32>
    %465 = vector.broadcast %462 : vector<1x16xi32> to vector<16x16xi32>
    %466 = arith.cmpi eq, %465, %464 : vector<16x16xi32>
    %467 = arith.andi %14, %466 : vector<16x16xi1>
    %c0_i32_164 = arith.constant 0 : i32
    %468 = vector.broadcast %c0_i32_164 : i32 to vector<1x16xi32>
    %469 = arith.cmpi sgt, %7, %468 : vector<1x16xi32>
    %470 = vector.broadcast %469 : vector<1x16xi1> to vector<16x16xi1>
    %471 = arith.andi %467, %470 : vector<16x16xi1>
    %472 = arith.extui %471 : vector<16x16xi1> to vector<16x16xi32>
    %473 = arith.sitofp %472 : vector<16x16xi32> to vector<16x16xf32>
    %474 = arith.truncf %473 : vector<16x16xf32> to vector<16x16xbf16>
    %475 = arith.truncf %457 : vector<16x32xf32> to vector<16x32xbf16>
    %cst_165 = arith.constant dense<0.000000e+00> : vector<16x32xf32>
    %476 = tpu.matmul %474, %475, %cst_165 {dimension_numbers = #tpu.dot_dimension_numbers<[1], [0], [0], [1], [0, 0, 1, 1], [], []>} : vector<16x16xbf16>, vector<16x32xbf16>, vector<16x32xf32> -> vector<16x32xf32>
    %c0_166 = arith.constant 0 : index
    %c0_167 = arith.constant 0 : index
    %477 = vector.load %arg11[%c0_166, %c0_167] : memref<40x128xf32, #tpu.memory_space<vmem>>, vector<40x128xf32>
    %478 = arith.truncf %476 : vector<16x32xf32> to vector<16x32xbf16>
    %479 = vector.extract_strided_slice %477 {offsets = [0, 0], sizes = [32, 128], strides = [1, 1]} : vector<40x128xf32> to vector<32x128xf32>
    %480 = arith.truncf %479 : vector<32x128xf32> to vector<32x128xbf16>
    %cst_168 = arith.constant dense<0.000000e+00> : vector<16x128xf32>
    %481 = tpu.matmul %478, %480, %cst_168 {dimension_numbers = #tpu.dot_dimension_numbers<[1], [0], [0], [1], [0, 0, 1, 1], [], []>} : vector<16x32xbf16>, vector<32x128xbf16>, vector<16x128xf32> -> vector<16x128xf32>
    %482 = vector.extract_strided_slice %477 {offsets = [32, 0], sizes = [1, 128], strides = [1, 1]} : vector<40x128xf32> to vector<1x128xf32>
    %483 = vector.broadcast %482 : vector<1x128xf32> to vector<16x128xf32>
    %484 = arith.addf %481, %483 : vector<16x128xf32>
    %c0_169 = arith.constant 0 : index
    %c0_170 = arith.constant 0 : index
    %485 = vector.load %arg12[%c0_169, %c0_170] : memref<16x128xf32, #tpu.memory_space<vmem>>, vector<16x128xf32>
    tpu.vector_store %arg12[%c0_169, %c0_170], %484 {strides = array<i32>} : memref<16x128xf32, #tpu.memory_space<vmem>>, vector<16x128xf32>,
    return
  }
  func.func @transform_0(%arg0: i32) -> (i32, i32, i32) {
    %c0_i32 = arith.constant 0 : i32
    %c0_i32_0 = arith.constant 0 : i32
    %c0_i32_1 = arith.constant 0 : i32
    %c0_i32_2 = arith.constant 0 : i32
    return %c0_i32, %c0_i32_0, %c0_i32_1 : i32, i32, i32
  }
  func.func @transform_1(%arg0: i32) -> (i32, i32, i32) {
    %c0_i32 = arith.constant 0 : i32
    %c0_i32_0 = arith.constant 0 : i32
    %c0_i32_1 = arith.constant 0 : i32
    %c0_i32_2 = arith.constant 0 : i32
    return %c0_i32, %c0_i32_0, %c0_i32_1 : i32, i32, i32
  }
  func.func @transform_2(%arg0: i32) -> (i32, i32) {
    %c0_i32 = arith.constant 0 : i32
    %c0_i32_0 = arith.constant 0 : i32
    %c0_i32_1 = arith.constant 0 : i32
    return %c0_i32, %c0_i32_0 : i32, i32
  }
  func.func @transform_3(%arg0: i32) -> (i32, i32, i32) {
    %c0_i32 = arith.constant 0 : i32
    %c0_i32_0 = arith.constant 0 : i32
    %c0_i32_1 = arith.constant 0 : i32
    %c0_i32_2 = arith.constant 0 : i32
    return %c0_i32, %c0_i32_0, %c0_i32_1 : i32, i32, i32
  }
  func.func @transform_4(%arg0: i32) -> (i32, i32, i32, i32) {
    %c0_i32 = arith.constant 0 : i32
    %c0_i32_0 = arith.constant 0 : i32
    %c0_i32_1 = arith.constant 0 : i32
    %c0_i32_2 = arith.constant 0 : i32
    %c0_i32_3 = arith.constant 0 : i32
    return %c0_i32, %c0_i32_0, %c0_i32_1, %c0_i32_2 : i32, i32, i32, i32
  }
  func.func @transform_5(%arg0: i32) -> (i32, i32, i32) {
    %c0_i32 = arith.constant 0 : i32
    %c0_i32_0 = arith.constant 0 : i32
    %c0_i32_1 = arith.constant 0 : i32
    %c0_i32_2 = arith.constant 0 : i32
    return %c0_i32, %c0_i32_0, %c0_i32_1 : i32, i32, i32
  }
  func.func @transform_6(%arg0: i32) -> (i32, i32, i32, i32) {
    %c0_i32 = arith.constant 0 : i32
    %c0_i32_0 = arith.constant 0 : i32
    %c0_i32_1 = arith.constant 0 : i32
    %c0_i32_2 = arith.constant 0 : i32
    %c0_i32_3 = arith.constant 0 : i32
    return %c0_i32, %c0_i32_0, %c0_i32_1, %c0_i32_2 : i32, i32, i32, i32
  }
  func.func @transform_7(%arg0: i32) -> (i32, i32, i32) {
    %c0_i32 = arith.constant 0 : i32
    %c0_i32_0 = arith.constant 0 : i32
    %c0_i32_1 = arith.constant 0 : i32
    %c0_i32_2 = arith.constant 0 : i32
    return %c0_i32, %c0_i32_0, %c0_i32_1 : i32, i32, i32
  }
  func.func @transform_8(%arg0: i32) -> (i32, i32, i32) {
    %c0_i32 = arith.constant 0 : i32
    %c0_i32_0 = arith.constant 0 : i32
    %c0_i32_1 = arith.constant 0 : i32
    %c0_i32_2 = arith.constant 0 : i32
    return %c0_i32, %c0_i32_0, %c0_i32_1 : i32, i32, i32
  }
  func.func @transform_9(%arg0: i32) -> (i32, i32, i32) {
    %c0_i32 = arith.constant 0 : i32
    %c0_i32_0 = arith.constant 0 : i32
    %c0_i32_1 = arith.constant 0 : i32
    %c0_i32_2 = arith.constant 0 : i32
    return %c0_i32, %c0_i32_0, %c0_i32_1 : i32, i32, i32
  }
  func.func @transform_10(%arg0: i32) -> (i32, i32) {
    %c0_i32 = arith.constant 0 : i32
    %c0_i32_0 = arith.constant 0 : i32
    %c0_i32_1 = arith.constant 0 : i32
    return %c0_i32, %c0_i32_0 : i32, i32
  }
  func.func @transform_11(%arg0: i32) -> (i32, i32) {
    %c0_i32 = arith.constant 0 : i32
    %c0_i32_0 = arith.constant 0 : i32
    %c0_i32_1 = arith.constant 0 : i32
    return %c0_i32, %c0_i32_0 : i32, i32
  }
}

</mosaic_0001>

<bundles_post_ra>
// kernel: xlm_roberta_ner_forward.1
= control target key start
LH: loop header
LB: loop body
LE: loop exit
PB: predicated region body
PF: predicated region fallthrough
CT: control target
= control target key end

     0   :  { %v3353_v0 = vmov 0.0   ;;  %vm3354_vm0 = vmmov 0   ;;  %v47_v3 = vlaneseq  ;;  %v3355_v4 = vmov 0   ;;  %s4058_s0 = inlined_call_operand.vmem [shape: s32[2,16,1], index: 0, kind: input, shape index: {}]   ;;  %s4059_s2 = inlined_call_operand.vmem [shape: bf16[144,32], index: 2, kind: input, shape index: {}]   ;;  %s4060_s6 = inlined_call_operand.vmem [shape: bf16[2,6,32,16], index: 6, kind: input, shape index: {}]   ;;  %s4061_s3 = inlined_call_operand.vmem [shape: f32[14,1,32], index: 3, kind: input, shape index: {}]   ;;  %s4062_s4 = inlined_call_operand.vmem [shape: f32[2,6,1,16], index: 4, kind: input, shape index: {}]   ;;  %s4063_s1 = inlined_call_operand.vmem [shape: s32[2,1,16], index: 1, kind: input, shape index: {}]   ;;  %s4064_s7 = inlined_call_operand.vmem [shape: bf16[2,32,32], index: 7, kind: input, shape index: {}]   ;;  %s4065_s8 = inlined_call_operand.vmem [shape: bf16[2,32,64], index: 8, kind: input, shape index: {}]   ;;  %s4066_s9 = inlined_call_operand.vmem [shape: bf16[2,64,32], index: 9, kind: input, shape index: {}]   ;;  %s4067_s5 = inlined_call_operand.vmem [shape: f32[2,1,64], index: 5, kind: input, shape index: {}]   ;;  %s4068_s10 = inlined_call_operand.vmem [shape: f32[40,128], index: 10, kind: input, shape index: {}]   ;;  %s4069_s11 = inlined_call_operand.vmem [shape: f32[16,128], index: 11, kind: output, shape index: {}]  }
   0x1   :  { %2965 = vmatprep.subr.bf16.mxu1 %v3353_v0  ;;  %v3422_v1 = vld [vmem:[%s4058_s0] sm:$0xff]  ;;  %v3427_v2 = vld [vmem:[%s4058_s0 + $0x8] sm:$0xff]  ;;  %2967 = vmatprep.mubr.msk.bf16.mxu1 %vm3354_vm0, %v3353_v0  ;;  %v3356_v7 = vmov 1.0|1.0   ;;  %vm82_vm10 = vcmask 130048   ;;  %v2674_v17 = vld [vmem:[%s4058_s0 + $0x18] sm:$0xff] }
   0x2   :  { %vm75_vm1 = vcmp.ne.s32.totalorder %v3422_v1, 1  ;;  %vm76_vm2 = vcmp.ne.s32.totalorder %v3427_v2, 1  ;;  %3243 = vset.pattern.permute.xlu1 %v3355_v4  ;;  %3242 = vset.pattern.permute.xlu0 %v3355_v4  ;;  %v3439_v5 = vshrl.u32 %v47_v3, 7  ;;  %v3441_v6 = vand.u32 127, %v47_v3  ;;  %v3244_v18 = vld [vmem:[%s4059_s2 + $0x30] ss:$0 sps:$4 sm:$0xff]  }
   0x3   :  { %vm2682_vm3 = vmpackc.low %vm76_vm2, %vm75_vm1  ;;  %134 = vperm.xlu1 %3243, %v3422_v1   ;;  %2979 = vmatprep.subr.bf16.mxu0 %v3353_v0  ;;  %vm290_vm11 = vcmask 1043456   ;;  %v3245_v20 = vld [vmem:[%s4059_s2 + $0x28] sm:$0xff]   ;;  %v3246_v21 = vld [vmem:[%s4059_s2 + $0x20] sm:$0xff]   ;;  %v77_v33 = vsel %vm75_vm1, 1, %v3355_v4  ;;  %v78_v40 = vsel %vm76_vm2, 1, %v3355_v4  ;;  %vm286_vm14 = vcmask 850944  }
   0x4   :  { %2966 = vmatpush3.bf16.msk.msra.mxu1 %vm2682_vm3, %v3356_v7  ;;  %2993 = vmatprep.mubr.msk.bf16.mxu0 %vm3354_vm0, %v3353_v0  ;;  %v3449_v8 = vadd.s32 8, %v3439_v5  ;;  %v52_v9 = vand.u32 4294967288, %v3439_v5  ;;  %v54_v10 = vand.u32 4294967288, %v3441_v6  ;;  %vm57_vm4 = vcmp.le.s32.totalorder %v3441_v6, %v3439_v5  ;;  %v3247_v22 = vld [vmem:[%s4059_s2 + $0x18] sm:$0xff]   ;;  %v3248_v23 = vld [vmem:[%s4059_s2 + $0x10] sm:$0xff]   ;;  %v3249_v24 = vld [vmem:[%s4059_s2 + $0x8] sm:$0xff]  }
   0x5   :  { %2971 = vmatprep.subr.bf16.mxu1 %v3353_v0  ;;  %v292_v19 = vsel %vm290_vm11, %v3244_v18, 0  ;;  %v3250_v25 = vld [vmem:[%s4059_s2] sm:$0xff]   ;;  %v3252_v44 = vld [vmem:[%s4059_s2 + $0x34] sm:$0xff]   ;;  %vm202_vm2 = vcmask 261120  }
   0x6   :  { %v53_v11 = vand.u32 4294967288, %v3449_v8  ;;  %vm3457_vm5 = vcmp.eq.s32.totalorder %v52_v9, %v54_v10  ;;  %vm58_vm6 = vcmp.le.s32.totalorder %v3441_v6, %v3449_v8  ;;  %2980 = vmatpush3.bf16.msra.mxu0 %v292_v19  ;;  %v3251_v37 = vld [vmem:[%s4059_s2 + $0x3c] sm:$0xff]   ;;  %v2673_v47 = vld [vmem:[%s4058_s0 + $0x10] sm:$0xff]  ;;  %v189_v49 = vld [vmem:[%s4059_s2 + $0x44] sm:$0xf] }
   0x7   :  { %137 = vperm.xlu1 %3243, %v3427_v2   ;;  %vm59_vm7 = vmand %vm3457_vm5, %vm57_vm4  ;;  %2981 = vmatprep.subr.bf16.mxu0 %v3353_v0  ;;  %v340_v53 = vsel %vm290_vm11, %v189_v49, 0  ;;  %v2613_v13 = vld [vmem:[%s4068_s10 + $0x10] sm:$0xff] }
   0x8   :  { %vm3466_vm8 = vcmp.eq.s32.totalorder %v53_v11, %v54_v10  ;;  %v2676_v14 = vsel %vm59_vm7, 1.0, %v3353_v0 }
   0x9   :  { %vm60_vm9 = vmand %vm3466_vm8, %vm58_vm6  ;;  %vm335_vm6 = vcmask 64512  }
   0xa   :  { %v2677_v15 = vsel %vm60_vm9, 1.0, %v3353_v0  ;;  %2982 = vmatpush3.bf16.msra.mxu0 %v3245_v20 }
   0xb   :  { %v65_v16 = vpack.c.bf16 %v2677_v15, %v2676_v14  ;;  %163 = vperm.xlu1 %3243, %v2674_v17   ;;  %2983 = vmatprep.subr.bf16.mxu0 %v3353_v0 }
   0xd   :  { %2968 = vmatmul.mubr.msk.bf16.vlgmr.msra.gmra.mxu1 %vm82_vm10, %v65_v16 }
   0xe   :  { %2975 = vmatprep.mubr.msk.bf16.mxu1 %vm3354_vm0, %v3353_v0  ;;  %2984 = vmatpush3.bf16.msra.mxu0 %v3246_v21 }
   0xf   :  { %2985 = vmatprep.subr.bf16.mxu0 %v3353_v0  ;;  %2972 = vmatpush3.bf16.msra.mxu1 %v3251_v37 }
  0x10   :  { %2973 = vmatprep.subr.bf16.mxu1 %v3353_v0 }
  0x12   :  { %2986 = vmatpush3.bf16.msra.mxu0 %v3247_v22 }
  0x13   :  { %2987 = vmatprep.subr.bf16.mxu0 %v3353_v0  ;;  %2974 = vmatpush3.bf16.msra.mxu1 %v3252_v44 }
  0x14   :  { %2997 = vmatprep.subr.bf16.mxu1 %v3353_v0 }
  0x16   :  { %2988 = vmatpush3.bf16.msra.mxu0 %v3248_v23 }
  0x17   :  { %2989 = vmatprep.subr.bf16.mxu0 %v3353_v0 }
  0x1a   :  { %2990 = vmatpush3.bf16.msra.mxu0 %v3249_v24 }
  0x1b   :  { %2991 = vmatprep.subr.bf16.mxu0 %v3353_v0 }
  0x1e   :  { %2992 = vmatpush3.bf16.msra.mxu0 %v3250_v25 }
  0x1f   :  { %3019 = vmatprep.subr.bf16.mxu0 %v3353_v0 }
  0x7e   :  { %v135_v26 = vpop.permute.xlu1 %134 }
  0x7f   :  { %vm139_vm12 = vcmp.eq.s32.totalorder %v135_v26, %v3441_v6  ;;  %v3253_v26 = vld [vmem:[%s4060_s6 + $0x8] sm:$0xff]  }
  0x80   :  { %v2685_v29 = vsel %vm139_vm12, 1.0, %v3353_v0 }
  0x82   :  { %v138_v27 = vpop.permute.xlu1 %137 }
  0x83   :  { %vm140_vm13 = vcmp.eq.s32.totalorder %v138_v27, %v3441_v6  ;;  %v3254_v27 = vld [vmem:[%s4060_s6 + $0x48] sm:$0xff]  }
  0x84   :  { %v2686_v30 = vsel %vm140_vm13, 1.0, %v3353_v0  ;;  %vm1371_vm13 = vcmask 523264  }
  0x85   :  { %v145_v35 = vpack.c.bf16 %v2686_v30, %v2685_v29  ;;  %v3256_v29 = vld [vmem:[%s4060_s6 + $0x40] sm:$0xff]  }
  0x86   :  { %v164_v55 = vpop.permute.xlu1 %163 }
  0x87   :  { %2994 = vmatmul.mubr.msk.bf16.vlgmr.msra.gmra.mxu0 %vm286_vm14, %v145_v35  ;;  %vm166_vm4 = vcmp.eq.s32.totalorder %v164_v55, %v3441_v6  ;;  %vm66_vm14 = vcmp.le.s32.totalorder %v3439_v5, %v3441_v6 }
  0x88   :  { %3023 = vmatprep.mubr.msk.bf16.mxu0 %vm3354_vm0, %v3353_v0  ;;  %v2690_v58 = vsel %vm166_vm4, 1.0, %v3353_v0  ;;  %3020 = vmatpush3.bf16.msra.mxu0 %v3254_v27  ;;  %v3259_v27 = vld [vmem:[%s4060_s6 + $0x18] sm:$0xff]  }
  0x89   :  { %3021 = vmatprep.subr.bf16.mxu0 %v3353_v0 }
  0x8c   :  { %3022 = vmatpush3.bf16.msra.mxu0 %v3256_v29  ;;  %v3260_v29 = vld [vmem:[%s4060_s6 + $0x10] sm:$0xff]  }
  0x8d   :  { %3033 = vmatprep.subr.bf16.mxu0 %v3353_v0 }
  0xcd   :  { %v120_v28 = vpop.f32.mrf.mxu1 }
  0xce   :  { %v3231_v31 = vtrunc.f32 %v120_v28  ;;  %v3255_v28 = vld [vmem:[%s4060_s6] sm:$0xff]  }
  0xcf   :  { %v2969_v32 = vpop.f32.mrf.mxu1 }
  0xd0   :  { %v3232_v34 = vcvt.f32.s32 %v3231_v31 }
  0xd1   :  { %v123_v36 = vpop.f32.mrf.mxu1 }
  0xd2   :  { %v3233_v38 = vtrunc.f32 %v123_v36  ;;  %v129_v39 = vmul.u32 %v3232_v34, %v77_v33 }
  0xd3   :  { %v2970_v41 = vpop.f32.mrf.mxu1 }
  0xd4   :  { %v3234_v42 = vcvt.f32.s32 %v3233_v38  ;;  %v131_v43 = vadd.s32 1, %v129_v39 }
  0xd6   :  { %v130_v45 = vmul.u32 %v3234_v42, %v78_v40  ;;  %147 = vperm.xlu0 %3242, %v131_v43  }
  0xd8   :  { %v132_v46 = vadd.s32 1, %v130_v45 }
  0xda   :  { %150 = vperm.xlu0 %3242, %v132_v46  }
  0xde   :  { %160 = vperm.xlu0 %3242, %v2673_v47   ;;  %v2704_v47 = vld [vmem:[%s4061_s3] ss:$0 sm:$0xff] }
 0x147   :  { %v328_v60 = vpop.f32.mrf.mxu0 }
 0x149   :  { %v2995_v61 = vpop.f32.mrf.mxu0 }
 0x14a   :  { %v2714_v61 = vld [vmem:[%s4062_s4 + $0x4] ss:$0 sm:$0xff] }
 0x14b   :  { %v331_v62 = vpop.f32.mrf.mxu0 }
 0x14d   :  { %v2996_v63 = vpop.f32.mrf.mxu0 }
 0x151   :  { %v148_v48 = vpop.permute.xlu0 %147 }
 0x152   :  { %vm152_vm15 = vcmp.eq.s32.totalorder %v148_v48, %v3441_v6 }
 0x153   :  { %v2687_v51 = vsel %vm152_vm15, 1.0, %v3353_v0  ;;  %vm67_vm15 = vcmp.le.s32.totalorder %v3449_v8, %v3441_v6 }
 0x155   :  { %v151_v50 = vpop.permute.xlu0 %150 }
 0x156   :  { %vm153_vm1 = vcmp.eq.s32.totalorder %v151_v50, %v3441_v6 }
 0x157   :  { %v2688_v52 = vsel %vm153_vm1, 1.0, %v3353_v0  ;;  %vm68_vm1 = vmand %vm3457_vm5, %vm66_vm14 }
 0x158   :  { %v158_v54 = vpack.c.bf16 %v2688_v52, %v2687_v51  ;;  %v2705_v52 = vld [vmem:[%s4061_s3 + $0x1] ss:$0 sm:$0xff] }
 0x159   :  { %v161_v56 = vpop.permute.xlu0 %160 }
 0x15a   :  { %vm165_vm3 = vcmp.eq.s32.totalorder %v161_v56, %v3441_v6  ;;  %2976 = vmatmul.mubr.msk.bf16.vlgmr.msra.gmra.mxu1 %vm202_vm2, %v158_v54  ;;  %v3257_v56 = vld [vmem:[%s4060_s6 + $0x28] sm:$0xff]   ;;  %v2836_v6 = vld [vmem:[%s4067_s5 + $0x1] ss:$0 sm:$0xff] }
 0x15b   :  { %2998 = vmatpush3.bf16.msra.mxu1 %v340_v53  ;;  %2999 = vmatprep.mubr.msk.bf16.mxu1 %vm3354_vm0, %v3353_v0  ;;  %v2689_v57 = vsel %vm165_vm3, 1.0, %v3353_v0  ;;  %vm69_vm3 = vmand %vm3466_vm8, %vm67_vm15 }
 0x15c   :  { %3003 = vmatprep.subr.bf16.mxu1 %v3353_v0  ;;  %v171_v59 = vpack.c.bf16 %v2690_v58, %v2689_v57  ;;  %v3258_v58 = vld [vmem:[%s4060_s6 + $0x20] sm:$0xff]   ;;  %vm2859_vm4 = vmpackc.low %vm69_vm3, %vm68_vm1 }
 0x162   :  { %3000 = vmatmul.mubr.msk.bf16.vlgmr.msra.gmra.mxu1 %vm335_vm6, %v171_v59 }
 0x163   :  { %3007 = vmatprep.mubr.msk.bf16.mxu1 %vm3354_vm0, %v3353_v0  ;;  %3004 = vmatpush3.bf16.msra.mxu1 %v3253_v26 }
 0x164   :  { %3005 = vmatprep.subr.bf16.mxu1 %v3353_v0 }
 0x167   :  { %3006 = vmatpush3.bf16.msra.mxu1 %v3255_v28 }
 0x168   :  { %3011 = vmatprep.subr.bf16.mxu1 %v3353_v0 }
 0x21a   :  { %v240_v1 = vpop.f32.mrf.mxu1 }
 0x21b   :  { %v329_v10 = vadd.f32 %v328_v60, %v240_v1 }
 0x21c   :  { %v2977_v2 = vpop.f32.mrf.mxu1 }
 0x21e   :  { %v243_v3 = vpop.f32.mrf.mxu1 }
 0x21f   :  { %v332_v16 = vadd.f32 %v331_v62, %v243_v3 }
 0x220   :  { %v2978_v9 = vpop.f32.mrf.mxu1 }
 0x222   :  { %v376_v11 = vpop.f32.mrf.mxu1 }
 0x223   :  { %v383_v14 = vadd.f32 %v376_v11, %v329_v10 }
 0x224   :  { %v3001_v15 = vpop.f32.mrf.mxu1 }
 0x225   :  { %v388_v17 = vsel %vm202_vm2, %v383_v14, 0.0  ;;  %v397_v18 = vmul.f32 %v383_v14, %v383_v14 }
 0x226   :  { %389 = vadd.xlane.f32.xlu0 %v388_v17  ;;  %v379_v19 = vpop.f32.mrf.mxu1 }
 0x227   :  { %v384_v20 = vadd.f32 %v379_v19, %v332_v16  ;;  %v399_v22 = vsel %vm202_vm2, %v397_v18, 0.0  ;;  %v2710_v16 = vld [vmem:[%s4062_s4 + $0x2] ss:$0 sm:$0xff] }
 0x228   :  { %v3002_v21 = vpop.f32.mrf.mxu1 }
 0x229   :  { %v391_v23 = vsel %vm202_vm2, %v384_v20, 0.0  ;;  %v398_v24 = vmul.f32 %v384_v20, %v384_v20 }
 0x22a   :  { %400 = vadd.xlane.f32.xlu0 %v399_v22  ;;  %392 = vadd.xlane.f32.xlu1 %v391_v23 }
 0x22b   :  { %v402_v25 = vsel %vm202_vm2, %v398_v24, 0.0  ;;  %v2706_v24 = vld [vmem:[%s4062_s4] ss:$0 sm:$0xff] }
 0x22e   :  { %403 = vadd.xlane.f32.xlu0 %v402_v25 }
 0x2af   :  { %v390_v30 = vpop.xlane.xlu0 %389 }
 0x2b0   :  { %v395_v31 = vmul.f32 0.03125, %v390_v30  ;;  %v3261_v30 = vld [vmem:[%s4060_s6 + $0x58] sm:$0xff]  }
 0x2b2   :  { %v407_v34 = vmul.f32 %v395_v31, %v395_v31  ;;  %v411_v44 = vsub.f32 %v383_v14, %v395_v31  ;;  %v3262_v31 = vld [vmem:[%s4060_s6 + $0x50] sm:$0xff]  }
 0x2b3   :  { %v401_v32 = vpop.xlane.xlu0 %400  ;;  %v393_v33 = vpop.xlane.xlu1 %392 }
 0x2b4   :  { %v405_v35 = vmul.f32 0.03125, %v401_v32  ;;  %v396_v36 = vmul.f32 0.03125, %v393_v33  ;;  %v44_v32 = vld [vmem:[%s4063_s1] sm:$0x1]  ;;  %v3647_v33 = vsub.s32 0, %v3439_v5 }
 0x2b5   :  { %vm435_vm7 = vcmp.gt.s32.totalorder %v44_v32, 0 }
 0x2b6   :  { %v409_v37 = vsub.f32 %v405_v35, %v407_v34  ;;  %v408_v40 = vmul.f32 %v396_v36, %v396_v36  ;;  %v412_v48 = vsub.f32 %v384_v20, %v396_v36  ;;  %v436_v34 = vsel %vm435_vm7, 1, %v3355_v4 }
 0x2b7   :  { %v404_v38 = vpop.xlane.xlu0 %403  ;;  %v440_v35 = vrot.slane %v436_v34, %v3647_v33 }
 0x2b8   :  { %v413_v39 = vadd.f32 1e-05, %v409_v37  ;;  %v406_v41 = vmul.f32 0.03125, %v404_v38  ;;  %v3357_v37 = vmov -1e+09  }
 0x2b9   :  { %vm441_vm9 = vcmp.eq.s32.totalorder %v440_v35, 1 }
 0x2ba   :  { %3293 = vrsqrt.f32 %v413_v39  ;;  %v410_v42 = vsub.f32 %v406_v41, %v408_v40  ;;  %vm442_vm11 = vmand %vm3457_vm5, %vm441_vm9 }
 0x2bb   :  { %v3653_v38 = vsel %vm442_vm11, 0.0, %v3357_v37  ;;  %vm443_vm12 = vmand %vm3466_vm8, %vm441_vm9 }
 0x2bc   :  { %v414_v43 = vadd.f32 1e-05, %v410_v42 }
 0x2be   :  { %3295 = vrsqrt.f32 %v414_v43  ;;  %v3658_v43 = vsel %vm443_vm12, 0.0, %v3357_v37 }
 0x2c7   :  { %v3294_v45 = vpop.eup %3293 }
 0x2c8   :  { %v417_v46 = vmul.f32 %v3294_v45, %v411_v44 }
 0x2ca   :  { %v425_v50 = vmul.f32 %v2704_v47, %v417_v46 }
 0x2cb   :  { %v3296_v49 = vpop.eup %3295 }
 0x2cc   :  { %v418_v51 = vmul.f32 %v3296_v49, %v412_v48  ;;  %v3576_v54 = vadd.f32 %v2705_v52, %v425_v50  ;;  %v2720_v50 = vld [vmem:[%s4062_s4 + $0x1] ss:$0 sm:$0xff] }
 0x2ce   :  { %v426_v53 = vmul.f32 %v2704_v47, %v418_v51 }
 0x2d0   :  { %v3578_v55 = vadd.f32 %v2705_v52, %v426_v53 }
 0x2d2   :  { %v3585_v57 = vpack.c.bf16 %v3578_v55, %v3576_v54 }
 0x2d4   :  { %3008 = vmatmul.mubr.msk.bf16.vlgmr.msra.gmra.mxu1 %vm202_vm2, %v3585_v57  ;;  %3024 = vmatmul.mubr.msk.bf16.vlgmr.msra.gmra.mxu0 %vm202_vm2, %v3585_v57 }
 0x2d5   :  { %3012 = vmatpush3.bf16.msra.mxu1 %v3257_v56  ;;  %3015 = vmatprep.mubr.msk.bf16.mxu1 %vm3354_vm0, %v3353_v0 }
 0x2d6   :  { %3013 = vmatprep.subr.bf16.mxu1 %v3353_v0  ;;  %3035 = vmatprep.mubr.msk.bf16.mxu0 %vm3354_vm0, %v3353_v0 }
 0x2d9   :  { %3014 = vmatpush3.bf16.msra.mxu1 %v3258_v58 }
 0x2da   :  { %3027 = vmatprep.subr.bf16.mxu1 %v3353_v0 }
 0x2dc   :  { %3016 = vmatmul.mubr.msk.bf16.vlgmr.msra.gmra.mxu1 %vm202_vm2, %v3585_v57 }
 0x2dd   :  { %3029 = vmatprep.mubr.msk.bf16.mxu1 %vm3354_vm0, %v3353_v0 }
 0x394   :  { %v536_v59 = vpop.f32.mrf.mxu1  ;;  %v654_v60 = vpop.f32.mrf.mxu0 }
 0x395   :  { %v655_v3 = vadd.f32 %v2714_v61, %v654_v60  ;;  %v537_v26 = vadd.f32 %v2706_v24, %v536_v59 }
 0x396   :  { %v3009_v62 = vpop.f32.mrf.mxu1  ;;  %v3025_v63 = vpop.f32.mrf.mxu0 }
 0x398   :  { %v539_v1 = vpop.f32.mrf.mxu1  ;;  %v657_v2 = vpop.f32.mrf.mxu0 }
 0x399   :  { %v658_v9 = vadd.f32 %v2714_v61, %v657_v2  ;;  %v540_v25 = vadd.f32 %v2706_v24, %v539_v1  ;;  %v2728_v61 = vld [vmem:[%s4062_s4 + $0x5] ss:$0 sm:$0xff] }
 0x39a   :  { %v3010_v10 = vpop.f32.mrf.mxu1  ;;  %v3026_v11 = vpop.f32.mrf.mxu0 }
 0x39b   :  { %v737_v14 = vpack.c.bf16 %v658_v9, %v655_v3  ;;  %v661_v28 = vpack.c.bf16 %v540_v25, %v537_v26 }
 0x39c   :  { %v595_v15 = vpop.f32.mrf.mxu1 }
 0x39d   :  { %3034 = vmatpush3.bf16.msra.mxu0 %v737_v14  ;;  %v596_v19 = vadd.f32 %v2710_v16, %v595_v15 }
 0x39e   :  { %v3017_v17 = vpop.f32.mrf.mxu1  ;;  %3047 = vmatprep.subr.bf16.mxu0 %v3353_v0 }
 0x3a0   :  { %v598_v18 = vpop.f32.mrf.mxu1 }
 0x3a1   :  { %v599_v20 = vadd.f32 %v2710_v16, %v598_v18 }
 0x3a2   :  { %v3018_v21 = vpop.f32.mrf.mxu1 }
 0x3a3   :  { %v662_v22 = vpack.c.bf16 %v599_v20, %v596_v19 }
 0x3a5   :  { %v667_v23 = vsel %vm82_vm10, %v662_v22, 0 }
 0x3a6   :  { %3028 = vmatpush3.bf16.xpose.msra.mxu1 %v667_v23 }
 0x3a7   :  { %3039 = vmatprep.subr.bf16.mxu1 %v3353_v0 }
 0x3ad   :  { %3030 = vmatmul.mubr.msk.bf16.vlgmr.msra.gmra.mxu1 %vm82_vm10, %v661_v28  ;;  %v3263_v28 = vld [vmem:[%s4060_s6 + $0x38] sm:$0xff]  }
 0x3ae   :  { %3040 = vmatpush3.bf16.msra.mxu1 %v3259_v27  ;;  %3043 = vmatprep.mubr.msk.bf16.mxu1 %vm3354_vm0, %v3353_v0 }
 0x3af   :  { %3041 = vmatprep.subr.bf16.mxu1 %v3353_v0 }
 0x3b2   :  { %3042 = vmatpush3.bf16.msra.mxu1 %v3260_v29 }
 0x3b3   :  { %3055 = vmatprep.subr.bf16.mxu1 %v3353_v0 }
 0x3b5   :  { %3044 = vmatmul.mubr.msk.bf16.vlgmr.msra.gmra.mxu1 %vm202_vm2, %v3585_v57 }
 0x3b6   :  { %3056 = vmatpush3.bf16.msra.mxu1 %v3261_v30  ;;  %3059 = vmatprep.mubr.msk.bf16.mxu1 %vm3354_vm0, %v3353_v0  ;;  %v3264_v30 = vld [vmem:[%s4060_s6 + $0x30] sm:$0xff]  }
 0x3b7   :  { %3057 = vmatprep.subr.bf16.mxu1 %v3353_v0 }
 0x3ba   :  { %3058 = vmatpush3.bf16.msra.mxu1 %v3262_v31 }
 0x3bb   :  { %3069 = vmatprep.subr.bf16.mxu1 %v3353_v0 }
 0x3bd   :  { %3060 = vmatmul.mubr.msk.bf16.vlgmr.msra.gmra.mxu1 %vm202_vm2, %v3585_v57 }
 0x3be   :  { %3071 = vmatprep.mubr.msk.bf16.mxu1 %vm3354_vm0, %v3353_v0 }
 0x46d   :  { %v703_v36 = vpop.f32.mrf.mxu1 }
 0x46e   :  { %v710_v39 = vmul.f32 0.25, %v703_v36 }
 0x46f   :  { %v3031_v40 = vpop.f32.mrf.mxu1 }
 0x470   :  { %v712_v41 = vadd.f32 %v710_v39, %v3653_v38  ;;  %v2724_v39 = vld [vmem:[%s4062_s4 + $0x3] ss:$0 sm:$0xff] }
 0x471   :  { %v706_v42 = vpop.f32.mrf.mxu1 }
 0x472   :  { %v711_v44 = vmul.f32 0.25, %v706_v42  ;;  %v714_v45 = vsel %vm82_vm10, %v712_v41, -inf }
 0x473   :  { %715 = vmax.xlane.f32.xlu1 %v714_v45  ;;  %v3032_v46 = vpop.f32.mrf.mxu1 }
 0x474   :  { %v713_v47 = vadd.f32 %v711_v44, %v3658_v43 }
 0x475   :  { %v835_v48 = vpop.f32.mrf.mxu1 }
 0x476   :  { %v717_v49 = vsel %vm82_vm10, %v713_v47, -inf  ;;  %v3666_v53 = vadd.f32 %v2720_v50, %v835_v48 }
 0x477   :  { %718 = vmax.xlane.f32.xlu0 %v717_v49  ;;  %v3045_v51 = vpop.f32.mrf.mxu1 }
 0x479   :  { %v838_v52 = vpop.f32.mrf.mxu1 }
 0x47a   :  { %v3668_v56 = vadd.f32 %v2720_v50, %v838_v52 }
 0x47b   :  { %v3046_v58 = vpop.f32.mrf.mxu1 }
 0x47c   :  { %v960_v59 = vpack.c.bf16 %v3668_v56, %v3666_v53 }
 0x47d   :  { %v953_v60 = vpop.f32.mrf.mxu1 }
 0x47e   :  { %v954_v1 = vadd.f32 %v2728_v61, %v953_v60 }
 0x47f   :  { %v3061_v62 = vpop.f32.mrf.mxu1 }
 0x481   :  { %v956_v63 = vpop.f32.mrf.mxu1 }
 0x482   :  { %v957_v2 = vadd.f32 %v2728_v61, %v956_v63 }
 0x483   :  { %v3062_v3 = vpop.f32.mrf.mxu1 }
 0x484   :  { %v1036_v9 = vpack.c.bf16 %v957_v2, %v954_v1 }
 0x486   :  { %3070 = vmatpush3.bf16.msra.mxu1 %v1036_v9 }
 0x487   :  { %3081 = vmatprep.subr.bf16.mxu1 %v3353_v0 }
 0x4fc   :  { %v716_v10 = vpop.xlane.xlu1 %715 }
 0x4fd   :  { %v720_v11 = vsub.f32 %v712_v41, %v716_v10 }
 0x4ff   :  { %v722_v14 = vmul.f32 1.442695, %v720_v11 }
 0x500   :  { %v719_v15 = vpop.xlane.xlu0 %718 }
 0x501   :  { %3297 = vpow2.f32 %v722_v14  ;;  %v721_v16 = vsub.f32 %v713_v47, %v719_v15 }
 0x503   :  { %v724_v17 = vmul.f32 1.442695, %v721_v16 }
 0x505   :  { %3299 = vpow2.f32 %v724_v17 }
 0x50e   :  { %v3298_v18 = vpop.eup %3297 }
 0x50f   :  { %v726_v19 = vsel %vm82_vm10, %v3298_v18, 0.0 }
 0x510   :  { %727 = vadd.xlane.f32.xlu1 %v726_v19 }
 0x512   :  { %v3300_v20 = vpop.eup %3299 }
 0x513   :  { %v729_v21 = vsel %vm82_vm10, %v3300_v20, 0.0 }
 0x514   :  { %730 = vadd.xlane.f32.xlu0 %v729_v21 }
 0x599   :  { %v728_v22 = vpop.xlane.xlu1 %727 }
 0x59a   :  { %3301 = vrcp.f32 %v728_v22  ;;  %v3266_v22 = vld [vmem:[%s4064_s7 + $0x8] sm:$0xff]  }
 0x59d   :  { %v731_v23 = vpop.xlane.xlu0 %730 }
 0x59e   :  { %3303 = vrcp.f32 %v731_v23 }
 0x5a7   :  { %v3302_v24 = vpop.eup %3301 }
 0x5a8   :  { %v734_v26 = vmul.f32 %v3302_v24, %v3298_v18 }
 0x5ab   :  { %v3304_v25 = vpop.eup %3303 }
 0x5ac   :  { %v735_v27 = vmul.f32 %v3304_v25, %v3300_v20  ;;  %v3265_v20 = vld [vmem:[%s4064_s7] sm:$0xff]  }
 0x5ae   :  { %v736_v29 = vpack.c.bf16 %v735_v27, %v734_v26 }
 0x5b0   :  { %3036 = vmatmul.mubr.msk.bf16.vlgmr.msra.gmra.mxu0 %vm82_vm10, %v736_v29 }
 0x5b1   :  { %3048 = vmatpush3.bf16.msra.mxu0 %v3263_v28  ;;  %3051 = vmatprep.mubr.msk.bf16.mxu0 %vm3354_vm0, %v3353_v0 }
 0x5b2   :  { %3049 = vmatprep.subr.bf16.mxu0 %v3353_v0 }
 0x5b5   :  { %3050 = vmatpush3.bf16.msra.mxu0 %v3264_v30 }
 0x5b6   :  { %3063 = vmatprep.subr.bf16.mxu0 %v3353_v0 }
 0x5b8   :  { %3052 = vmatmul.mubr.msk.bf16.vlgmr.msra.gmra.mxu0 %vm202_vm2, %v3585_v57 }
 0x5b9   :  { %3065 = vmatprep.mubr.msk.bf16.mxu0 %vm3354_vm0, %v3353_v0 }
 0x670   :  { %v775_v31 = vpop.f32.mrf.mxu0 }
 0x672   :  { %v3037_v32 = vpop.f32.mrf.mxu0 }
 0x674   :  { %v778_v34 = vpop.f32.mrf.mxu0 }
 0x675   :  { %v782_v35 = vpack.c.bf16 %v778_v34, %v775_v31  ;;  %v2739_v34 = vld [vmem:[%s4061_s3 + $0x2] ss:$0 sm:$0xff] }
 0x676   :  { %v3038_v36 = vpop.f32.mrf.mxu0 }
 0x678   :  { %v894_v37 = vpop.f32.mrf.mxu0 }
 0x679   :  { %v895_v42 = vadd.f32 %v2724_v39, %v894_v37 }
 0x67a   :  { %v3053_v40 = vpop.f32.mrf.mxu0 }
 0x67c   :  { %v897_v41 = vpop.f32.mrf.mxu0 }
 0x67d   :  { %v898_v44 = vadd.f32 %v2724_v39, %v897_v41 }
 0x67e   :  { %v3054_v45 = vpop.f32.mrf.mxu0 }
 0x67f   :  { %v961_v46 = vpack.c.bf16 %v898_v44, %v895_v42 }
 0x681   :  { %v966_v57 = vsel %vm82_vm10, %v961_v46, 0 }
 0x682   :  { %3064 = vmatpush3.bf16.xpose.msra.mxu0 %v966_v57 }
 0x683   :  { %3075 = vmatprep.subr.bf16.mxu0 %v3353_v0 }
 0x689   :  { %3066 = vmatmul.mubr.msk.bf16.vlgmr.msra.gmra.mxu0 %vm82_vm10, %v960_v59 }
 0x68a   :  { %3077 = vmatprep.mubr.msk.bf16.mxu0 %vm3354_vm0, %v3353_v0  ;;  %3076 = vmatpush3.bf16.msra.mxu0 %v3266_v22 }
 0x68b   :  { %3087 = vmatprep.subr.bf16.mxu0 %v3353_v0 }
 0x749   :  { %v1002_v47 = vpop.f32.mrf.mxu0 }
 0x74a   :  { %v1009_v48 = vmul.f32 0.25, %v1002_v47 }
 0x74b   :  { %v3067_v49 = vpop.f32.mrf.mxu0 }
 0x74c   :  { %v1011_v50 = vadd.f32 %v1009_v48, %v3653_v38 }
 0x74d   :  { %v1005_v51 = vpop.f32.mrf.mxu0 }
 0x74e   :  { %v1010_v52 = vmul.f32 0.25, %v1005_v51  ;;  %v1013_v53 = vsel %vm82_vm10, %v1011_v50, -inf  ;;  %v3268_v51 = vld [vmem:[%s4065_s8] sm:$0xff]  }
 0x74f   :  { %1014 = vmax.xlane.f32.xlu1 %v1013_v53  ;;  %v3068_v56 = vpop.f32.mrf.mxu0 }
 0x750   :  { %v1012_v58 = vadd.f32 %v1010_v52, %v3658_v43 }
 0x752   :  { %v1016_v60 = vsel %vm82_vm10, %v1012_v58, -inf }
 0x753   :  { %1017 = vmax.xlane.f32.xlu0 %v1016_v60 }
 0x7d8   :  { %v1015_v59 = vpop.xlane.xlu1 %1014 }
 0x7d9   :  { %v1019_v61 = vsub.f32 %v1011_v50, %v1015_v59 }
 0x7db   :  { %v1021_v62 = vmul.f32 1.442695, %v1019_v61 }
 0x7dc   :  { %v1018_v63 = vpop.xlane.xlu0 %1017 }
 0x7dd   :  { %3305 = vpow2.f32 %v1021_v62  ;;  %v1020_v1 = vsub.f32 %v1012_v58, %v1018_v63 }
 0x7df   :  { %v1023_v2 = vmul.f32 1.442695, %v1020_v1 }
 0x7e1   :  { %3307 = vpow2.f32 %v1023_v2 }
 0x7ea   :  { %v3306_v3 = vpop.eup %3305 }
 0x7eb   :  { %v1025_v9 = vsel %vm82_vm10, %v3306_v3, 0.0 }
 0x7ec   :  { %1026 = vadd.xlane.f32.xlu1 %v1025_v9 }
 0x7ee   :  { %v3308_v10 = vpop.eup %3307 }
 0x7ef   :  { %v1028_v11 = vsel %vm82_vm10, %v3308_v10, 0.0 }
 0x7f0   :  { %1029 = vadd.xlane.f32.xlu0 %v1028_v11 }
 0x875   :  { %v1027_v14 = vpop.xlane.xlu1 %1026 }
 0x876   :  { %3309 = vrcp.f32 %v1027_v14 }
 0x879   :  { %v1030_v15 = vpop.xlane.xlu0 %1029 }
 0x87a   :  { %3311 = vrcp.f32 %v1030_v15  ;;  %v2742_v15 = vld [vmem:[%s4061_s3 + $0x3] ss:$0 sm:$0xff] }
 0x883   :  { %v3310_v16 = vpop.eup %3309 }
 0x884   :  { %v1033_v18 = vmul.f32 %v3310_v16, %v3306_v3 }
 0x887   :  { %v3312_v17 = vpop.eup %3311 }
 0x888   :  { %v1034_v19 = vmul.f32 %v3312_v17, %v3308_v10 }
 0x88a   :  { %v1035_v21 = vpack.c.bf16 %v1034_v19, %v1033_v18 }
 0x88c   :  { %3072 = vmatmul.mubr.msk.bf16.vlgmr.msra.gmra.mxu1 %vm82_vm10, %v1035_v21 }
 0x88d   :  { %3082 = vmatpush3.bf16.msra.mxu1 %v3265_v20  ;;  %3083 = vmatprep.mubr.msk.bf16.mxu1 %vm3354_vm0, %v3353_v0  ;;  %v2743_v20 = vld [vmem:[%s4061_s3 + $0x4] ss:$0 sm:$0xff] }
 0x88e   :  { %3095 = vmatprep.subr.bf16.mxu1 %v3353_v0 }
 0x894   :  { %3084 = vmatmul.mubr.msk.bf16.vlgmr.msra.gmra.mxu1 %vm82_vm10, %v782_v35 }
 0x895   :  { %3103 = vmatprep.mubr.msk.bf16.mxu1 %vm3354_vm0, %v3353_v0 }
 0x94c   :  { %v1074_v23 = vpop.f32.mrf.mxu1 }
 0x94e   :  { %v3073_v24 = vpop.f32.mrf.mxu1 }
 0x950   :  { %v1077_v25 = vpop.f32.mrf.mxu1 }
 0x951   :  { %v1081_v26 = vpack.c.bf16 %v1077_v25, %v1074_v23  ;;  %v3269_v25 = vld [vmem:[%s4066_s9 + $0x18] sm:$0xff]  }
 0x952   :  { %v3074_v27 = vpop.f32.mrf.mxu1  ;;  %3096 = vmatpush3.bf16.msra.mxu1 %v3269_v25 }
 0x953   :  { %3078 = vmatmul.mubr.msk.bf16.vlgmr.msra.gmra.mxu0 %vm82_vm10, %v1081_v26  ;;  %v3270_v26 = vld [vmem:[%s4066_s9 + $0x10] sm:$0xff]   ;;  %3097 = vmatprep.subr.bf16.mxu1 %v3353_v0  ;;  %v3271_v27 = vld [vmem:[%s4066_s9 + $0x8] sm:$0xff]  }
 0x954   :  { %v1175_v28 = vpop.f32.mrf.mxu1  ;;  %3091 = vmatprep.mubr.msk.bf16.mxu0 %vm3354_vm0, %v3353_v0 }
 0x956   :  { %v3085_v29 = vpop.f32.mrf.mxu1  ;;  %3098 = vmatpush3.bf16.msra.mxu1 %v3270_v26 }
 0x957   :  { %3099 = vmatprep.subr.bf16.mxu1 %v3353_v0  ;;  %v2744_v29 = vld [vmem:[%s4067_s5] ss:$0 sm:$0xff] }
 0x958   :  { %v1178_v30 = vpop.f32.mrf.mxu1 }
 0x95a   :  { %v3086_v31 = vpop.f32.mrf.mxu1  ;;  %3100 = vmatpush3.bf16.msra.mxu1 %v3271_v27 }
 0x95b   :  { %3101 = vmatprep.subr.bf16.mxu1 %v3353_v0 }
 0xa13   :  { %v1125_v32 = vpop.f32.mrf.mxu0 }
 0xa14   :  { %v1176_v35 = vadd.f32 %v1175_v28, %v1125_v32  ;;  %v3272_v28 = vld [vmem:[%s4066_s9] sm:$0xff]  }
 0xa15   :  { %v3079_v36 = vpop.f32.mrf.mxu0  ;;  %3102 = vmatpush3.bf16.msra.mxu1 %v3272_v28 }
 0xa16   :  { %v1190_v37 = vadd.f32 %v2739_v34, %v1176_v35  ;;  %3123 = vmatprep.subr.bf16.mxu1 %v3353_v0 }
 0xa17   :  { %v1128_v39 = vpop.f32.mrf.mxu0 }
 0xa18   :  { %v1192_v40 = vadd.f32 %v1190_v37, %v3576_v54  ;;  %v1179_v41 = vadd.f32 %v1178_v30, %v1128_v39  ;;  %v3267_v54 = vld [vmem:[%s4065_s8 + $0x8] sm:$0xff]  }
 0xa19   :  { %v3080_v42 = vpop.f32.mrf.mxu0  ;;  %3088 = vmatpush3.bf16.msra.mxu0 %v3267_v54 }
 0xa1a   :  { %v1191_v44 = vadd.f32 %v2739_v34, %v1179_v41  ;;  %v1198_v45 = vsel %vm202_vm2, %v1192_v40, 0.0  ;;  %v1206_v46 = vmul.f32 %v1192_v40, %v1192_v40  ;;  %3089 = vmatprep.subr.bf16.mxu0 %v3353_v0 }
 0xa1b   :  { %1199 = vadd.xlane.f32.xlu1 %v1198_v45 }
 0xa1c   :  { %v1193_v57 = vadd.f32 %v1191_v44, %v3578_v55  ;;  %v1208_v47 = vsel %vm202_vm2, %v1206_v46, 0.0 }
 0xa1d   :  { %3090 = vmatpush3.bf16.msra.mxu0 %v3268_v51 }
 0xa1e   :  { %v1201_v48 = vsel %vm202_vm2, %v1193_v57, 0.0  ;;  %v1207_v49 = vmul.f32 %v1193_v57, %v1193_v57  ;;  %3107 = vmatprep.subr.bf16.mxu0 %v3353_v0 }
 0xa1f   :  { %1209 = vadd.xlane.f32.xlu1 %v1208_v47  ;;  %1202 = vadd.xlane.f32.xlu0 %v1201_v48 }
 0xa20   :  { %v1211_v50 = vsel %vm202_vm2, %v1207_v49, 0.0 }
 0xa23   :  { %1212 = vadd.xlane.f32.xlu0 %v1211_v50 }
 0xaa4   :  { %v1200_v55 = vpop.xlane.xlu1 %1199 }
 0xaa5   :  { %v1204_v52 = vmul.f32 0.03125, %v1200_v55 }
 0xaa7   :  { %v1216_v58 = vmul.f32 %v1204_v52, %v1204_v52  ;;  %v1220_v10 = vsub.f32 %v1192_v40, %v1204_v52 }
 0xaa8   :  { %v1210_v53 = vpop.xlane.xlu1 %1209  ;;  %v1203_v56 = vpop.xlane.xlu0 %1202 }
 0xaa9   :  { %v1214_v60 = vmul.f32 0.03125, %v1210_v53  ;;  %v1205_v59 = vmul.f32 0.03125, %v1203_v56 }
 0xaab   :  { %v1218_v61 = vsub.f32 %v1214_v60, %v1216_v58  ;;  %v1217_v1 = vmul.f32 %v1205_v59, %v1205_v59  ;;  %v1221_v16 = vsub.f32 %v1193_v57, %v1205_v59  ;;  %v2749_v58 = vld [vmem:[%s4061_s3 + $0x5] ss:$0 sm:$0xff] }
 0xaac   :  { %v1213_v62 = vpop.xlane.xlu0 %1212 }
 0xaad   :  { %v1222_v63 = vadd.f32 1e-05, %v1218_v61  ;;  %v1215_v2 = vmul.f32 0.03125, %v1213_v62 }
 0xaaf   :  { %3313 = vrsqrt.f32 %v1222_v63  ;;  %v1219_v3 = vsub.f32 %v1215_v2, %v1217_v1 }
 0xab1   :  { %v1223_v9 = vadd.f32 1e-05, %v1219_v3 }
 0xab3   :  { %3315 = vrsqrt.f32 %v1223_v9 }
 0xabc   :  { %v3314_v11 = vpop.eup %3313 }
 0xabd   :  { %v1226_v14 = vmul.f32 %v3314_v11, %v1220_v10 }
 0xabf   :  { %v1234_v19 = vmul.f32 %v2742_v15, %v1226_v14 }
 0xac0   :  { %v3316_v17 = vpop.eup %3315 }
 0xac1   :  { %v1227_v18 = vmul.f32 %v3316_v17, %v1221_v16  ;;  %v1242_v22 = vadd.f32 %v2743_v20, %v1234_v19  ;;  %v3273_v17 = vld [vmem:[%s4060_s6 + $0x68] sm:$0xff]   ;;  %v3275_v19 = vld [vmem:[%s4060_s6 + $0x60] sm:$0xff]  }
 0xac3   :  { %v1235_v21 = vmul.f32 %v2742_v15, %v1227_v18  ;;  %v3274_v18 = vld [vmem:[%s4060_s6 + $0xa8] sm:$0xff]  }
 0xac5   :  { %v1243_v23 = vadd.f32 %v2743_v20, %v1235_v21  ;;  %v3276_v20 = vld [vmem:[%s4060_s6 + $0xa0] sm:$0xff]  }
 0xac7   :  { %v1244_v24 = vpack.c.bf16 %v1243_v23, %v1242_v22 }
 0xac9   :  { %3092 = vmatmul.mubr.msk.bf16.vlgmr.msra.gmra.mxu0 %vm202_vm2, %v1244_v24 }
 0xaca   :  { %3111 = vmatprep.mubr.msk.bf16.mxu0 %vm3354_vm0, %v3353_v0  ;;  %3108 = vmatpush3.bf16.msra.mxu0 %v3273_v17 }
 0xacb   :  { %3109 = vmatprep.subr.bf16.mxu0 %v3353_v0 }
 0xace   :  { %3110 = vmatpush3.bf16.msra.mxu0 %v3275_v19 }
 0xacf   :  { %3115 = vmatprep.subr.bf16.mxu0 %v3353_v0 }
 0xb89   :  { %v1305_v30 = vpop.f32.mrf.mxu0 }
 0xb8a   :  { %v1306_v31 = vadd.f32 %v2744_v29, %v1305_v30 }
 0xb8b   :  { %v3093_v32 = vpop.f32.mrf.mxu0 }
 0xb8c   :  { %v1314_v34 = vmul.f32 0.044715, %v1306_v31  ;;  %v1312_v54 = vmul.f32 0.5, %v1306_v31 }
 0xb8d   :  { %v1308_v35 = vpop.f32.mrf.mxu0 }
 0xb8e   :  { %v1316_v36 = vmul.f32 %v1314_v34, %v1306_v31  ;;  %v1309_v37 = vadd.f32 %v2744_v29, %v1308_v35 }
 0xb8f   :  { %v3094_v39 = vpop.f32.mrf.mxu0 }
 0xb90   :  { %v1318_v40 = vmul.f32 %v1316_v36, %v1306_v31  ;;  %v1315_v41 = vmul.f32 0.044715, %v1309_v37  ;;  %v1313_v51 = vmul.f32 0.5, %v1309_v37 }
 0xb92   :  { %v1320_v42 = vadd.f32 %v1318_v40, %v1306_v31  ;;  %v1317_v44 = vmul.f32 %v1315_v41, %v1309_v37  ;;  %v2757_v40 = vld [vmem:[%s4061_s3 + $0x6] ss:$0 sm:$0xff] }
 0xb94   :  { %v1322_v45 = vmul.f32 0.7978846, %v1320_v42  ;;  %v1319_v46 = vmul.f32 %v1317_v44, %v1309_v37 }
 0xb96   :  { %3317 = vtanh.f32 %v1322_v45  ;;  %v1321_v57 = vadd.f32 %v1319_v46, %v1309_v37  ;;  %v2758_v46 = vld [vmem:[%s4061_s3 + $0x7] ss:$0 sm:$0xff] }
 0xb98   :  { %v1323_v47 = vmul.f32 0.7978846, %v1321_v57 }
 0xb9a   :  { %3319 = vtanh.f32 %v1323_v47 }
 0xba3   :  { %v3318_v48 = vpop.eup %3317 }
 0xba4   :  { %v1326_v49 = vadd.f32 1.0, %v3318_v48 }
 0xba6   :  { %v1328_v52 = vmul.f32 %v1326_v49, %v1312_v54  ;;  %v3277_v49 = vld [vmem:[%s4060_s6 + $0x88] sm:$0xff]   ;;  %v3278_v54 = vld [vmem:[%s4060_s6 + $0x80] sm:$0xff]  }
 0xba7   :  { %v3320_v50 = vpop.eup %3319 }
 0xba8   :  { %v1327_v55 = vadd.f32 1.0, %v3320_v50 }
 0xbaa   :  { %v1329_v53 = vmul.f32 %v1327_v55, %v1313_v51 }
 0xbac   :  { %v1330_v56 = vpack.c.bf16 %v1329_v53, %v1328_v52  ;;  %v2801_v52 = vld [vmem:[%s4062_s4 + $0xa] ss:$0 sm:$0xff] }
 0xbae   :  { %3104 = vmatmul.mubr.msk.bf16.vlgmr.msra.gmra.mxu1 %vm1371_vm13, %v1330_v56 }
 0xbaf   :  { %3127 = vmatprep.mubr.msk.bf16.mxu1 %vm3354_vm0, %v3353_v0  ;;  %3124 = vmatpush3.bf16.msra.mxu1 %v3274_v18  ;;  %v2793_v18 = vld [vmem:[%s4062_s4 + $0x6] ss:$0 sm:$0xff] }
 0xbb0   :  { %3125 = vmatprep.subr.bf16.mxu1 %v3353_v0 }
 0xbb3   :  { %3126 = vmatpush3.bf16.msra.mxu1 %v3276_v20 }
 0xbb4   :  { %3137 = vmatprep.subr.bf16.mxu1 %v3353_v0 }
 0xc6e   :  { %v1409_v60 = vpop.f32.mrf.mxu1 }
 0xc6f   :  { %v1410_v59 = vadd.f32 %v2749_v58, %v1409_v60 }
 0xc70   :  { %v3105_v61 = vpop.f32.mrf.mxu1 }
 0xc71   :  { %v1416_v62 = vadd.f32 %v1410_v59, %v1242_v22 }
 0xc72   :  { %v1412_v63 = vpop.f32.mrf.mxu1 }
 0xc73   :  { %v1413_v1 = vadd.f32 %v2749_v58, %v1412_v63  ;;  %v1422_v2 = vsel %vm202_vm2, %v1416_v62, 0.0  ;;  %v1430_v3 = vmul.f32 %v1416_v62, %v1416_v62 }
 0xc74   :  { %1423 = vadd.xlane.f32.xlu1 %v1422_v2  ;;  %v3106_v9 = vpop.f32.mrf.mxu1 }
 0xc75   :  { %v1417_v10 = vadd.f32 %v1413_v1, %v1243_v23  ;;  %v1432_v11 = vsel %vm202_vm2, %v1430_v3, 0.0  ;;  %v2797_v3 = vld [vmem:[%s4062_s4 + $0x8] ss:$0 sm:$0xff] }
 0xc77   :  { %v1425_v14 = vsel %vm202_vm2, %v1417_v10, 0.0  ;;  %v1431_v15 = vmul.f32 %v1417_v10, %v1417_v10 }
 0xc78   :  { %1433 = vadd.xlane.f32.xlu1 %v1432_v11  ;;  %1426 = vadd.xlane.f32.xlu0 %v1425_v14 }
 0xc79   :  { %v1435_v16 = vsel %vm202_vm2, %v1431_v15, 0.0 }
 0xc7c   :  { %1436 = vadd.xlane.f32.xlu0 %v1435_v16 }
 0xcfd   :  { %v1424_v21 = vpop.xlane.xlu1 %1423 }
 0xcfe   :  { %v1428_v22 = vmul.f32 0.03125, %v1424_v21  ;;  %v3279_v21 = vld [vmem:[%s4060_s6 + $0x78] sm:$0xff]  }
 0xd00   :  { %v1440_v25 = vmul.f32 %v1428_v22, %v1428_v22  ;;  %v1444_v36 = vsub.f32 %v1416_v62, %v1428_v22 }
 0xd01   :  { %v1434_v23 = vpop.xlane.xlu1 %1433  ;;  %v1427_v24 = vpop.xlane.xlu0 %1426 }
 0xd02   :  { %v1438_v26 = vmul.f32 0.03125, %v1434_v23  ;;  %v1429_v27 = vmul.f32 0.03125, %v1427_v24  ;;  %v3280_v23 = vld [vmem:[%s4060_s6 + $0x70] sm:$0xff]   ;;  %v3281_v24 = vld [vmem:[%s4060_s6 + $0xb8] sm:$0xff]  }
 0xd04   :  { %v1442_v28 = vsub.f32 %v1438_v26, %v1440_v25  ;;  %v1441_v31 = vmul.f32 %v1429_v27, %v1429_v27  ;;  %v1445_v41 = vsub.f32 %v1417_v10, %v1429_v27  ;;  %v3282_v25 = vld [vmem:[%s4060_s6 + $0xb0] sm:$0xff]  }
 0xd05   :  { %v1437_v29 = vpop.xlane.xlu0 %1436 }
 0xd06   :  { %v1446_v30 = vadd.f32 1e-05, %v1442_v28  ;;  %v1439_v32 = vmul.f32 0.03125, %v1437_v29 }
 0xd08   :  { %3321 = vrsqrt.f32 %v1446_v30  ;;  %v1443_v34 = vsub.f32 %v1439_v32, %v1441_v31 }
 0xd0a   :  { %v1447_v35 = vadd.f32 1e-05, %v1443_v34 }
 0xd0c   :  { %3323 = vrsqrt.f32 %v1447_v35 }
 0xd15   :  { %v3322_v37 = vpop.eup %3321 }
 0xd16   :  { %v1450_v39 = vmul.f32 %v3322_v37, %v1444_v36 }
 0xd18   :  { %v1458_v44 = vmul.f32 %v2757_v40, %v1450_v39  ;;  %v2807_v39 = vld [vmem:[%s4062_s4 + $0x7] ss:$0 sm:$0xff] }
 0xd19   :  { %v3324_v42 = vpop.eup %3323 }
 0xd1a   :  { %v1451_v45 = vmul.f32 %v3324_v42, %v1445_v41  ;;  %v3801_v47 = vadd.f32 %v2758_v46, %v1458_v44 }
 0xd1c   :  { %v1459_v57 = vmul.f32 %v2757_v40, %v1451_v45 }
 0xd1e   :  { %v3803_v48 = vadd.f32 %v2758_v46, %v1459_v57 }
 0xd20   :  { %v3810_v50 = vpack.c.bf16 %v3803_v48, %v3801_v47 }
 0xd22   :  { %3112 = vmatmul.mubr.msk.bf16.vlgmr.msra.gmra.mxu0 %vm202_vm2, %v3810_v50  ;;  %3128 = vmatmul.mubr.msk.bf16.vlgmr.msra.gmra.mxu1 %vm202_vm2, %v3810_v50 }
 0xd23   :  { %3116 = vmatpush3.bf16.msra.mxu0 %v3277_v49  ;;  %3119 = vmatprep.mubr.msk.bf16.mxu0 %vm3354_vm0, %v3353_v0  ;;  %v2815_v49 = vld [vmem:[%s4062_s4 + $0xb] ss:$0 sm:$0xff] }
 0xd24   :  { %3117 = vmatprep.subr.bf16.mxu0 %v3353_v0  ;;  %3139 = vmatprep.mubr.msk.bf16.mxu1 %vm3354_vm0, %v3353_v0 }
 0xd27   :  { %3118 = vmatpush3.bf16.msra.mxu0 %v3278_v54 }
 0xd28   :  { %3131 = vmatprep.subr.bf16.mxu0 %v3353_v0 }
 0xd2a   :  { %3120 = vmatmul.mubr.msk.bf16.vlgmr.msra.gmra.mxu0 %vm202_vm2, %v3810_v50 }
 0xd2b   :  { %3133 = vmatprep.mubr.msk.bf16.mxu0 %vm3354_vm0, %v3353_v0 }
 0xde2   :  { %v1561_v51 = vpop.f32.mrf.mxu0  ;;  %v1679_v55 = vpop.f32.mrf.mxu1 }
 0xde3   :  { %v1680_v59 = vadd.f32 %v2801_v52, %v1679_v55  ;;  %v1562_v20 = vadd.f32 %v2793_v18, %v1561_v51 }
 0xde4   :  { %v3113_v53 = vpop.f32.mrf.mxu0  ;;  %v3129_v56 = vpop.f32.mrf.mxu1 }
 0xde6   :  { %v1564_v58 = vpop.f32.mrf.mxu0  ;;  %v1682_v60 = vpop.f32.mrf.mxu1 }
 0xde7   :  { %v1683_v61 = vadd.f32 %v2801_v52, %v1682_v60  ;;  %v1565_v19 = vadd.f32 %v2793_v18, %v1564_v58  ;;  %v3283_v18 = vld [vmem:[%s4060_s6 + $0x98] sm:$0xff]  }
 0xde8   :  { %v3114_v62 = vpop.f32.mrf.mxu0  ;;  %v3130_v63 = vpop.f32.mrf.mxu1 }
 0xde9   :  { %v1762_v1 = vpack.c.bf16 %v1683_v61, %v1680_v59  ;;  %v1686_v22 = vpack.c.bf16 %v1565_v19, %v1562_v20  ;;  %v3284_v20 = vld [vmem:[%s4060_s6 + $0x90] sm:$0xff]  }
 0xdea   :  { %v1620_v2 = vpop.f32.mrf.mxu0 }
 0xdeb   :  { %3138 = vmatpush3.bf16.msra.mxu1 %v1762_v1  ;;  %v1621_v11 = vadd.f32 %v2797_v3, %v1620_v2 }
 0xdec   :  { %v3121_v9 = vpop.f32.mrf.mxu0  ;;  %3151 = vmatprep.subr.bf16.mxu1 %v3353_v0 }
 0xdee   :  { %v1623_v10 = vpop.f32.mrf.mxu0 }
 0xdef   :  { %v1624_v14 = vadd.f32 %v2797_v3, %v1623_v10 }
 0xdf0   :  { %v3122_v15 = vpop.f32.mrf.mxu0 }
 0xdf1   :  { %v1687_v16 = vpack.c.bf16 %v1624_v14, %v1621_v11 }
 0xdf3   :  { %v1692_v17 = vsel %vm82_vm10, %v1687_v16, 0 }
 0xdf4   :  { %3132 = vmatpush3.bf16.xpose.msra.mxu0 %v1692_v17 }
 0xdf5   :  { %3143 = vmatprep.subr.bf16.mxu0 %v3353_v0 }
 0xdfb   :  { %3134 = vmatmul.mubr.msk.bf16.vlgmr.msra.gmra.mxu0 %vm82_vm10, %v1686_v22 }
 0xdfc   :  { %3144 = vmatpush3.bf16.msra.mxu0 %v3279_v21  ;;  %3147 = vmatprep.mubr.msk.bf16.mxu0 %vm3354_vm0, %v3353_v0 }
 0xdfd   :  { %3145 = vmatprep.subr.bf16.mxu0 %v3353_v0 }
 0xe00   :  { %3146 = vmatpush3.bf16.msra.mxu0 %v3280_v23 }
 0xe01   :  { %3159 = vmatprep.subr.bf16.mxu0 %v3353_v0 }
 0xe03   :  { %3148 = vmatmul.mubr.msk.bf16.vlgmr.msra.gmra.mxu0 %vm202_vm2, %v3810_v50 }
 0xe04   :  { %3160 = vmatpush3.bf16.msra.mxu0 %v3281_v24  ;;  %3163 = vmatprep.mubr.msk.bf16.mxu0 %vm3354_vm0, %v3353_v0 }
 0xe05   :  { %3161 = vmatprep.subr.bf16.mxu0 %v3353_v0 }
 0xe08   :  { %3162 = vmatpush3.bf16.msra.mxu0 %v3282_v25 }
 0xe09   :  { %3173 = vmatprep.subr.bf16.mxu0 %v3353_v0 }
 0xe0b   :  { %3164 = vmatmul.mubr.msk.bf16.vlgmr.msra.gmra.mxu0 %vm202_vm2, %v3810_v50 }
 0xe0c   :  { %3175 = vmatprep.mubr.msk.bf16.mxu0 %vm3354_vm0, %v3353_v0 }
 0xebb   :  { %v1728_v26 = vpop.f32.mrf.mxu0 }
 0xebc   :  { %v1735_v27 = vmul.f32 0.25, %v1728_v26 }
 0xebd   :  { %v3135_v28 = vpop.f32.mrf.mxu0 }
 0xebe   :  { %v1737_v29 = vadd.f32 %v1735_v27, %v3653_v38  ;;  %v2811_v27 = vld [vmem:[%s4062_s4 + $0x9] ss:$0 sm:$0xff] }
 0xebf   :  { %v1731_v30 = vpop.f32.mrf.mxu0 }
 0xec0   :  { %v1736_v31 = vmul.f32 0.25, %v1731_v30  ;;  %v1739_v32 = vsel %vm82_vm10, %v1737_v29, -inf }
 0xec1   :  { %1740 = vmax.xlane.f32.xlu1 %v1739_v32  ;;  %v3136_v34 = vpop.f32.mrf.mxu0 }
 0xec2   :  { %v1738_v35 = vadd.f32 %v1736_v31, %v3658_v43 }
 0xec3   :  { %v1860_v36 = vpop.f32.mrf.mxu0 }
 0xec4   :  { %v1742_v37 = vsel %vm82_vm10, %v1738_v35, -inf  ;;  %v3875_v42 = vadd.f32 %v2807_v39, %v1860_v36 }
 0xec5   :  { %1743 = vmax.xlane.f32.xlu0 %v1742_v37  ;;  %v3149_v40 = vpop.f32.mrf.mxu0 }
 0xec7   :  { %v1863_v41 = vpop.f32.mrf.mxu0 }
 0xec8   :  { %v3877_v44 = vadd.f32 %v2807_v39, %v1863_v41 }
 0xec9   :  { %v3150_v45 = vpop.f32.mrf.mxu0 }
 0xeca   :  { %v1985_v46 = vpack.c.bf16 %v3877_v44, %v3875_v42 }
 0xecb   :  { %v1978_v57 = vpop.f32.mrf.mxu0 }
 0xecc   :  { %v1979_v55 = vadd.f32 %v2815_v49, %v1978_v57 }
 0xecd   :  { %v3165_v54 = vpop.f32.mrf.mxu0 }
 0xecf   :  { %v1981_v51 = vpop.f32.mrf.mxu0 }
 0xed0   :  { %v1982_v52 = vadd.f32 %v2815_v49, %v1981_v51 }
 0xed1   :  { %v3166_v53 = vpop.f32.mrf.mxu0 }
 0xed2   :  { %v2061_v56 = vpack.c.bf16 %v1982_v52, %v1979_v55 }
 0xed4   :  { %3174 = vmatpush3.bf16.msra.mxu0 %v2061_v56 }
 0xed5   :  { %3185 = vmatprep.subr.bf16.mxu0 %v3353_v0 }
 0xf4a   :  { %v1741_v58 = vpop.xlane.xlu1 %1740 }
 0xf4b   :  { %v1745_v60 = vsub.f32 %v1737_v29, %v1741_v58 }
 0xf4d   :  { %v1747_v59 = vmul.f32 1.442695, %v1745_v60 }
 0xf4e   :  { %v1744_v61 = vpop.xlane.xlu0 %1743 }
 0xf4f   :  { %3325 = vpow2.f32 %v1747_v59  ;;  %v1746_v62 = vsub.f32 %v1738_v35, %v1744_v61 }
 0xf51   :  { %v1749_v63 = vmul.f32 1.442695, %v1746_v62 }
 0xf53   :  { %3327 = vpow2.f32 %v1749_v63 }
 0xf5c   :  { %v3326_v1 = vpop.eup %3325 }
 0xf5d   :  { %v1751_v2 = vsel %vm82_vm10, %v3326_v1, 0.0 }
 0xf5e   :  { %1752 = vadd.xlane.f32.xlu1 %v1751_v2 }
 0xf60   :  { %v3328_v3 = vpop.eup %3327 }
 0xf61   :  { %v1754_v9 = vsel %vm82_vm10, %v3328_v3, 0.0 }
 0xf62   :  { %1755 = vadd.xlane.f32.xlu0 %v1754_v9 }
 0xfe7   :  { %v1753_v10 = vpop.xlane.xlu1 %1752 }
 0xfe8   :  { %3329 = vrcp.f32 %v1753_v10 }
 0xfeb   :  { %v1756_v11 = vpop.xlane.xlu0 %1755 }
 0xfec   :  { %3331 = vrcp.f32 %v1756_v11 }
 0xff5   :  { %v3330_v14 = vpop.eup %3329 }
 0xff6   :  { %v1759_v16 = vmul.f32 %v3330_v14, %v3326_v1  ;;  %v3285_v1 = vld [vmem:[%s4064_s7 + $0x10] sm:$0xff]  }
 0xff9   :  { %v3332_v15 = vpop.eup %3331 }
 0xffa   :  { %v1760_v17 = vmul.f32 %v3332_v15, %v3328_v3  ;;  %v3286_v3 = vld [vmem:[%s4064_s7 + $0x18] sm:$0xff]  }
 0xffc   :  { %v1761_v19 = vpack.c.bf16 %v1760_v17, %v1759_v16 }
 0xffe   :  { %3140 = vmatmul.mubr.msk.bf16.vlgmr.msra.gmra.mxu1 %vm82_vm10, %v1761_v19 }
 0xfff   :  { %3152 = vmatpush3.bf16.msra.mxu1 %v3283_v18  ;;  %3155 = vmatprep.mubr.msk.bf16.mxu1 %vm3354_vm0, %v3353_v0 }
0x1000   :  { %3153 = vmatprep.subr.bf16.mxu1 %v3353_v0 }
0x1003   :  { %3154 = vmatpush3.bf16.msra.mxu1 %v3284_v20 }
0x1004   :  { %3167 = vmatprep.subr.bf16.mxu1 %v3353_v0 }
0x1006   :  { %3156 = vmatmul.mubr.msk.bf16.vlgmr.msra.gmra.mxu1 %vm202_vm2, %v3810_v50 }
0x1007   :  { %3169 = vmatprep.mubr.msk.bf16.mxu1 %vm3354_vm0, %v3353_v0 }
0x10be   :  { %v1800_v21 = vpop.f32.mrf.mxu1 }
0x10c0   :  { %v3141_v22 = vpop.f32.mrf.mxu1 }
0x10c2   :  { %v1803_v23 = vpop.f32.mrf.mxu1 }
0x10c3   :  { %v1807_v24 = vpack.c.bf16 %v1803_v23, %v1800_v21  ;;  %v2826_v21 = vld [vmem:[%s4061_s3 + $0x8] ss:$0 sm:$0xff] }
0x10c4   :  { %v3142_v25 = vpop.f32.mrf.mxu1 }
0x10c6   :  { %v1919_v26 = vpop.f32.mrf.mxu1 }
0x10c7   :  { %v1920_v30 = vadd.f32 %v2811_v27, %v1919_v26 }
0x10c8   :  { %v3157_v28 = vpop.f32.mrf.mxu1 }
0x10ca   :  { %v1922_v29 = vpop.f32.mrf.mxu1 }
0x10cb   :  { %v1923_v31 = vadd.f32 %v2811_v27, %v1922_v29 }
0x10cc   :  { %v3158_v32 = vpop.f32.mrf.mxu1 }
0x10cd   :  { %v1986_v34 = vpack.c.bf16 %v1923_v31, %v1920_v30 }
0x10cf   :  { %v1991_v50 = vsel %vm82_vm10, %v1986_v34, 0 }
0x10d0   :  { %3168 = vmatpush3.bf16.xpose.msra.mxu1 %v1991_v50 }
0x10d1   :  { %3179 = vmatprep.subr.bf16.mxu1 %v3353_v0 }
0x10d7   :  { %3170 = vmatmul.mubr.msk.bf16.vlgmr.msra.gmra.mxu1 %vm82_vm10, %v1985_v46 }
0x10d8   :  { %3181 = vmatprep.mubr.msk.bf16.mxu1 %vm3354_vm0, %v3353_v0  ;;  %3180 = vmatpush3.bf16.msra.mxu1 %v3286_v3 }
0x10d9   :  { %3191 = vmatprep.subr.bf16.mxu1 %v3353_v0 }
0x1197   :  { %v2027_v35 = vpop.f32.mrf.mxu1 }
0x1198   :  { %v2034_v36 = vmul.f32 0.25, %v2027_v35 }
0x1199   :  { %v3171_v37 = vpop.f32.mrf.mxu1 }
0x119a   :  { %v2036_v39 = vadd.f32 %v2034_v36, %v3653_v38  ;;  %v3288_v37 = vld [vmem:[%s4065_s8 + $0x10] sm:$0xff]  }
0x119b   :  { %v2030_v40 = vpop.f32.mrf.mxu1 }
0x119c   :  { %v2035_v41 = vmul.f32 0.25, %v2030_v40  ;;  %v2038_v42 = vsel %vm82_vm10, %v2036_v39, -inf }
0x119d   :  { %2039 = vmax.xlane.f32.xlu1 %v2038_v42  ;;  %v3172_v44 = vpop.f32.mrf.mxu1 }
0x119e   :  { %v2037_v45 = vadd.f32 %v2035_v41, %v3658_v43 }
0x11a0   :  { %v2041_v57 = vsel %vm82_vm10, %v2037_v45, -inf }
0x11a1   :  { %2042 = vmax.xlane.f32.xlu0 %v2041_v57 }
0x1226   :  { %v2040_v46 = vpop.xlane.xlu1 %2039 }
0x1227   :  { %v2044_v49 = vsub.f32 %v2036_v39, %v2040_v46 }
0x1229   :  { %v2046_v54 = vmul.f32 1.442695, %v2044_v49 }
0x122a   :  { %v2043_v51 = vpop.xlane.xlu0 %2042 }
0x122b   :  { %3333 = vpow2.f32 %v2046_v54  ;;  %v2045_v55 = vsub.f32 %v2037_v45, %v2043_v51 }
0x122d   :  { %v2048_v52 = vmul.f32 1.442695, %v2045_v55 }
0x122f   :  { %3335 = vpow2.f32 %v2048_v52 }
0x1238   :  { %v3334_v38 = vpop.eup %3333 }
0x1239   :  { %v2050_v53 = vsel %vm82_vm10, %v3334_v38, 0.0 }
0x123a   :  { %2051 = vadd.xlane.f32.xlu1 %v2050_v53 }
0x123c   :  { %v3336_v56 = vpop.eup %3335 }
0x123d   :  { %v2053_v58 = vsel %vm82_vm10, %v3336_v56, 0.0 }
0x123e   :  { %2054 = vadd.xlane.f32.xlu0 %v2053_v58  ;;  %v2829_v58 = vld [vmem:[%s4061_s3 + $0x9] ss:$0 sm:$0xff] }
0x12c3   :  { %v2052_v43 = vpop.xlane.xlu1 %2051 }
0x12c4   :  { %3337 = vrcp.f32 %v2052_v43 }
0x12c7   :  { %v2055_v60 = vpop.xlane.xlu0 %2054 }
0x12c8   :  { %3339 = vrcp.f32 %v2055_v60 }
0x12d1   :  { %v3338_v59 = vpop.eup %3337 }
0x12d2   :  { %v2058_v62 = vmul.f32 %v3338_v59, %v3334_v38 }
0x12d5   :  { %v3340_v61 = vpop.eup %3339 }
0x12d6   :  { %v2059_v63 = vmul.f32 %v3340_v61, %v3336_v56 }
0x12d8   :  { %v2060_v2 = vpack.c.bf16 %v2059_v63, %v2058_v62  ;;  %v2830_v62 = vld [vmem:[%s4061_s3 + $0xa] ss:$0 sm:$0xff] }
0x12da   :  { %3176 = vmatmul.mubr.msk.bf16.vlgmr.msra.gmra.mxu0 %vm82_vm10, %v2060_v2 }
0x12db   :  { %3186 = vmatpush3.bf16.msra.mxu0 %v3285_v1  ;;  %3187 = vmatprep.mubr.msk.bf16.mxu0 %vm3354_vm0, %v3353_v0 }
0x12dc   :  { %3199 = vmatprep.subr.bf16.mxu0 %v3353_v0 }
0x12e2   :  { %3188 = vmatmul.mubr.msk.bf16.vlgmr.msra.gmra.mxu0 %vm82_vm10, %v1807_v24 }
0x12e3   :  { %3207 = vmatprep.mubr.msk.bf16.mxu0 %vm3354_vm0, %v3353_v0 }
0x139a   :  { %v2099_v9 = vpop.f32.mrf.mxu0 }
0x139c   :  { %v3177_v10 = vpop.f32.mrf.mxu0 }
0x139d   :  { %v3290_v10 = vld [vmem:[%s4066_s9 + $0x30] sm:$0xff]  }
0x139e   :  { %v2102_v11 = vpop.f32.mrf.mxu0 }
0x139f   :  { %v2106_v14 = vpack.c.bf16 %v2102_v11, %v2099_v9  ;;  %v3289_v9 = vld [vmem:[%s4066_s9 + $0x38] sm:$0xff]   ;;  %v3291_v11 = vld [vmem:[%s4066_s9 + $0x28] sm:$0xff]  }
0x13a0   :  { %v3178_v15 = vpop.f32.mrf.mxu0  ;;  %3200 = vmatpush3.bf16.msra.mxu0 %v3289_v9 }
0x13a1   :  { %3182 = vmatmul.mubr.msk.bf16.vlgmr.msra.gmra.mxu1 %vm82_vm10, %v2106_v14  ;;  %3201 = vmatprep.subr.bf16.mxu0 %v3353_v0  ;;  %v3292_v14 = vld [vmem:[%s4066_s9 + $0x20] sm:$0xff]  }
0x13a2   :  { %v2200_v16 = vpop.f32.mrf.mxu0  ;;  %3195 = vmatprep.mubr.msk.bf16.mxu1 %vm3354_vm0, %v3353_v0  ;;  %v3984_v15 = vld [vmem:[%s4063_s1 + $0x1] sm:$0x1] }
0x13a4   :  { %v3189_v17 = vpop.f32.mrf.mxu0  ;;  %3202 = vmatpush3.bf16.msra.mxu0 %v3290_v10 }
0x13a5   :  { %3203 = vmatprep.subr.bf16.mxu0 %v3353_v0 }
0x13a6   :  { %v2203_v18 = vpop.f32.mrf.mxu0 }
0x13a8   :  { %v3190_v19 = vpop.f32.mrf.mxu0  ;;  %3204 = vmatpush3.bf16.msra.mxu0 %v3291_v11 }
0x13a9   :  { %3205 = vmatprep.subr.bf16.mxu0 %v3353_v0 }
0x13ac   :  { %3206 = vmatpush3.bf16.msra.mxu0 %v3292_v14 }
0x13ad   :  { %3223 = vmatprep.subr.bf16.mxu0 %v3353_v0 }
0x1461   :  { %v2150_v20 = vpop.f32.mrf.mxu1 }
0x1462   :  { %v2201_v22 = vadd.f32 %v2200_v16, %v2150_v20  ;;  %v2495_v16 = vcvt.s32.f32 %v3984_v15 }
0x1463   :  { %v3183_v23 = vpop.f32.mrf.mxu1 }
0x1464   :  { %v2215_v24 = vadd.f32 %v2826_v21, %v2201_v22  ;;  %v2496_v17 = vpack.c.bf16 %v2495_v16, %v2495_v16 }
0x1465   :  { %v2153_v25 = vpop.f32.mrf.mxu1 }
0x1466   :  { %v2217_v26 = vadd.f32 %v2215_v24, %v3801_v47  ;;  %v2204_v27 = vadd.f32 %v2203_v18, %v2153_v25  ;;  %v3287_v47 = vld [vmem:[%s4065_s8 + $0x18] sm:$0xff]  }
0x1467   :  { %v3184_v28 = vpop.f32.mrf.mxu1  ;;  %3192 = vmatpush3.bf16.msra.mxu1 %v3287_v47 }
0x1468   :  { %v2216_v29 = vadd.f32 %v2826_v21, %v2204_v27  ;;  %v2223_v30 = vsel %vm202_vm2, %v2217_v26, 0.0  ;;  %v2231_v31 = vmul.f32 %v2217_v26, %v2217_v26  ;;  %3193 = vmatprep.subr.bf16.mxu1 %v3353_v0 }
0x1469   :  { %2224 = vadd.xlane.f32.xlu1 %v2223_v30 }
0x146a   :  { %v2218_v32 = vadd.f32 %v2216_v29, %v3803_v48  ;;  %v2233_v34 = vsel %vm202_vm2, %v2231_v31, 0.0 }
0x146b   :  { %3194 = vmatpush3.bf16.msra.mxu1 %v3288_v37 }
0x146c   :  { %v2226_v50 = vsel %vm202_vm2, %v2218_v32, 0.0  ;;  %v2232_v35 = vmul.f32 %v2218_v32, %v2218_v32  ;;  %3211 = vmatprep.subr.bf16.mxu1 %v3353_v0 }
0x146d   :  { %2234 = vadd.xlane.f32.xlu1 %v2233_v34  ;;  %2227 = vadd.xlane.f32.xlu0 %v2226_v50 }
0x146e   :  { %v2236_v36 = vsel %vm202_vm2, %v2232_v35, 0.0 }
0x1471   :  { %2237 = vadd.xlane.f32.xlu0 %v2236_v36 }
0x14f2   :  { %v2225_v48 = vpop.xlane.xlu1 %2224 }
0x14f3   :  { %v2229_v39 = vmul.f32 0.03125, %v2225_v48 }
0x14f5   :  { %v2241_v42 = vmul.f32 %v2229_v39, %v2229_v39  ;;  %v2245_v38 = vsub.f32 %v2217_v26, %v2229_v39 }
0x14f6   :  { %v2235_v40 = vpop.xlane.xlu1 %2234  ;;  %v2228_v41 = vpop.xlane.xlu0 %2227 }
0x14f7   :  { %v2239_v44 = vmul.f32 0.03125, %v2235_v40  ;;  %v2230_v45 = vmul.f32 0.03125, %v2228_v41  ;;  %v2849_v41 = vld [vmem:[%s4061_s3 + $0xb] ss:$0 sm:$0xff] }
0x14f9   :  { %v2243_v57 = vsub.f32 %v2239_v44, %v2241_v42  ;;  %v2242_v54 = vmul.f32 %v2230_v45, %v2230_v45  ;;  %v2246_v43 = vsub.f32 %v2218_v32, %v2230_v45 }
0x14fa   :  { %v2238_v46 = vpop.xlane.xlu0 %2237 }
0x14fb   :  { %v2247_v49 = vadd.f32 1e-05, %v2243_v57  ;;  %v2240_v51 = vmul.f32 0.03125, %v2238_v46 }
0x14fd   :  { %3341 = vrsqrt.f32 %v2247_v49  ;;  %v2244_v55 = vsub.f32 %v2240_v51, %v2242_v54 }
0x14ff   :  { %v2248_v52 = vadd.f32 1e-05, %v2244_v55 }
0x1501   :  { %3343 = vrsqrt.f32 %v2248_v52 }
0x150a   :  { %v3342_v53 = vpop.eup %3341 }
0x150b   :  { %v2251_v56 = vmul.f32 %v3342_v53, %v2245_v38 }
0x150d   :  { %v2259_v61 = vmul.f32 %v2829_v58, %v2251_v56 }
0x150e   :  { %v3344_v60 = vpop.eup %3343 }
0x150f   :  { %v2252_v59 = vmul.f32 %v3344_v60, %v2246_v43  ;;  %v3956_v1 = vadd.f32 %v2830_v62, %v2259_v61 }
0x1511   :  { %v2260_v63 = vmul.f32 %v2829_v58, %v2252_v59 }
0x1513   :  { %v3958_v2 = vadd.f32 %v2830_v62, %v2260_v63 }
0x1515   :  { %v2269_v3 = vpack.c.bf16 %v3958_v2, %v3956_v1 }
0x1517   :  { %3196 = vmatmul.mubr.msk.bf16.vlgmr.msra.gmra.mxu1 %vm202_vm2, %v2269_v3 }
0x1518   :  { %3213 = vmatprep.mubr.msk.bf16.mxu1 %vm3354_vm0, %v3353_v0  ;;  %3212 = vmatpush3.bf16.msk.msra.mxu1 %vm2859_vm4, %v3356_v7 }
0x1519   :  { %3217 = vmatprep.subr.bf16.mxu1 %v3353_v0 }
0x151f   :  { %3214 = vmatmul.mubr.msk.bf16.vlgmr.msra.gmra.mxu1 %vm82_vm10, %v2496_v17 }
0x1520   :  { %3219 = vmatprep.mubr.msk.bf16.mxu1 %vm3354_vm0, %v3353_v0 }
0x15d7   :  { %v2332_v18 = vpop.f32.mrf.mxu1 }
0x15d8   :  { %v2333_v19 = vadd.f32 %v2836_v6, %v2332_v18 }
0x15d9   :  { %v3197_v20 = vpop.f32.mrf.mxu1 }
0x15da   :  { %v2341_v21 = vmul.f32 0.044715, %v2333_v19  ;;  %v2339_v36 = vmul.f32 0.5, %v2333_v19 }
0x15db   :  { %v2335_v22 = vpop.f32.mrf.mxu1 }
0x15dc   :  { %v2343_v23 = vmul.f32 %v2341_v21, %v2333_v19  ;;  %v2336_v24 = vadd.f32 %v2836_v6, %v2335_v22 }
0x15dd   :  { %v3198_v25 = vpop.f32.mrf.mxu1 }
0x15de   :  { %v2345_v7 = vmul.f32 %v2343_v23, %v2333_v19  ;;  %v2342_v26 = vmul.f32 0.044715, %v2336_v24  ;;  %v2340_v47 = vmul.f32 0.5, %v2336_v24  ;;  %v2542_v23 = vand.u32 7, %v3439_v5  ;;  %v2857_v5 = vld [vmem:[%s4061_s3 + $0xc] ss:$0 sm:$0xff] }
0x15df   :  { %v2534_v43 = vpop.f32.mrf.mxu1 }
0x15e0   :  { %v2347_v27 = vadd.f32 %v2345_v7, %v2333_v19  ;;  %v2344_v28 = vmul.f32 %v2342_v26, %v2336_v24  ;;  %v3235_v14 = vtrunc.f32 %v2534_v43  ;;  %v2543_v7 = vand.u32 7, %v3449_v8 }
0x15e1   :  { %v3215_v60 = vpop.f32.mrf.mxu1 }
0x15e2   :  { %v2349_v29 = vmul.f32 0.7978846, %v2347_v27  ;;  %v2346_v30 = vmul.f32 %v2344_v28, %v2336_v24  ;;  %v3236_v20 = vcvt.f32.s32 %v3235_v14 }
0x15e3   :  { %v2537_v59 = vpop.f32.mrf.mxu1 }
0x15e4   :  { %3345 = vtanh.f32 %v2349_v29  ;;  %v2348_v31 = vadd.f32 %v2346_v30, %v2336_v24  ;;  %v2862_v22 = vadd.s32 4294967295, %v3236_v20 }
0x15e5   :  { %v3216_v61 = vpop.f32.mrf.mxu1 }
0x15e6   :  { %v2350_v32 = vmul.f32 0.7978846, %v2348_v31  ;;  %v2547_v24 = vrot.slane %v2862_v22, %v3647_v33  ;;  %v2858_v31 = vld [vmem:[%s4061_s3 + $0xd] ss:$0 sm:$0xff] }
0x15e8   :  { %3347 = vtanh.f32 %v2350_v32  ;;  %vm2548_vm6 = vcmp.eq.s32.totalorder %v2547_v24, %v2542_v23  ;;  %vm2549_vm7 = vcmp.eq.s32.totalorder %v2547_v24, %v2543_v7 }
0x15e9   :  { %vm2550_vm9 = vmand %vm3457_vm5, %vm2548_vm6 }
0x15ea   :  { %vm2551_vm12 = vmand %vm3466_vm8, %vm2549_vm7 }
0x15f1   :  { %v3346_v34 = vpop.eup %3345 }
0x15f2   :  { %v2353_v50 = vadd.f32 1.0, %v3346_v34 }
0x15f4   :  { %v2355_v48 = vmul.f32 %v2353_v50, %v2339_v36 }
0x15f5   :  { %v3348_v35 = vpop.eup %3347 }
0x15f6   :  { %v2354_v37 = vadd.f32 1.0, %v3348_v35 }
0x15f8   :  { %v2356_v39 = vmul.f32 %v2354_v37, %v2340_v47  ;;  %v2614_v37 = vld [vmem:[%s4068_s10 + $0x18] sm:$0xff] }
0x15fa   :  { %v2357_v40 = vpack.c.bf16 %v2356_v39, %v2355_v48  ;;  %v2618_v48 = vpack.c.bf16 %v2614_v37, %v2613_v13  ;;  %v2611_v39 = vld [vmem:[%s4068_s10] sm:$0xff] }
0x15fc   :  { %3208 = vmatmul.mubr.msk.bf16.vlgmr.msra.gmra.mxu0 %vm1371_vm13, %v2357_v40  ;;  %v2612_v40 = vld [vmem:[%s4068_s10 + $0x8] sm:$0xff] }
0x15fd   :  { %3227 = vmatprep.mubr.msk.bf16.mxu0 %vm3354_vm0, %v3353_v0  ;;  %vm2552_vm0 = vcmp.gt.s32.totalorder %v3984_v15, 0  ;;  %3224 = vmatpush3.bf16.msra.mxu0 %v2618_v48 }
0x15fe   :  { %v2553_v25 = vsel %vm2552_vm0, 1, %v3355_v4  ;;  %3225 = vmatprep.subr.bf16.mxu0 %v3353_v0 }
0x15ff   :  { %v2557_v26 = vrot.slane %v2553_v25, %v3647_v33 }
0x1601   :  { %vm2558_vm11 = vcmp.eq.s32.totalorder %v2557_v26, 1 }
0x1602   :  { %vm2559_vm13 = vmand %vm2550_vm9, %vm2558_vm11 }
0x1603   :  { %vm2560_vm14 = vmand %vm2551_vm12, %vm2558_vm11  ;;  %v2863_v32 = vsel %vm2559_vm13, 1.0, %v3353_v0 }
0x1604   :  { %v2864_v34 = vsel %vm2560_vm14, 1.0, %v3353_v0  ;;  %v2615_v0 = vld [vmem:[%s4068_s10 + $0x20] sm:$0xff] }
0x1605   :  { %v2565_v47 = vpack.c.bf16 %v2864_v34, %v2863_v32 }
0x16bc   :  { %v2436_v42 = vpop.f32.mrf.mxu0 }
0x16bd   :  { %v2437_v44 = vadd.f32 %v2849_v41, %v2436_v42 }
0x16be   :  { %v3209_v45 = vpop.f32.mrf.mxu0 }
0x16bf   :  { %v2443_v57 = vadd.f32 %v2437_v44, %v3956_v1 }
0x16c0   :  { %v2439_v46 = vpop.f32.mrf.mxu0 }
0x16c1   :  { %v2440_v49 = vadd.f32 %v2849_v41, %v2439_v46  ;;  %v2449_v54 = vsel %vm202_vm2, %v2443_v57, 0.0  ;;  %v2457_v51 = vmul.f32 %v2443_v57, %v2443_v57  ;;  %v2617_v41 = vpack.c.bf16 %v2612_v40, %v2611_v39 }
0x16c2   :  { %2450 = vadd.xlane.f32.xlu1 %v2449_v54  ;;  %v3210_v55 = vpop.f32.mrf.mxu0 }
0x16c3   :  { %v2444_v52 = vadd.f32 %v2440_v49, %v3958_v2  ;;  %v2459_v38 = vsel %vm202_vm2, %v2457_v51, 0.0  ;;  %3226 = vmatpush3.bf16.msra.mxu0 %v2617_v41  ;;  %v2622_v49 = vrot.slane %v2615_v0, %v3647_v33 }
0x16c5   :  { %v2452_v53 = vsel %vm202_vm2, %v2444_v52, 0.0  ;;  %v2458_v56 = vmul.f32 %v2444_v52, %v2444_v52 }
0x16c6   :  { %2460 = vadd.xlane.f32.xlu1 %v2459_v38  ;;  %2453 = vadd.xlane.f32.xlu0 %v2452_v53 }
0x16c7   :  { %v2462_v58 = vsel %vm202_vm2, %v2458_v56, 0.0 }
0x16ca   :  { %2463 = vadd.xlane.f32.xlu0 %v2462_v58 }
0x174b   :  { %v2451_v62 = vpop.xlane.xlu1 %2450 }
0x174c   :  { %v2455_v63 = vmul.f32 0.03125, %v2451_v62 }
0x174e   :  { %v2467_v9 = vmul.f32 %v2455_v63, %v2455_v63  ;;  %v2471_v27 = vsub.f32 %v2443_v57, %v2455_v63 }
0x174f   :  { %v2461_v1 = vpop.xlane.xlu1 %2460  ;;  %v2454_v3 = vpop.xlane.xlu0 %2453 }
0x1750   :  { %v2465_v2 = vmul.f32 0.03125, %v2461_v1  ;;  %v2456_v10 = vmul.f32 0.03125, %v2454_v3 }
0x1752   :  { %v2469_v11 = vsub.f32 %v2465_v2, %v2467_v9  ;;  %v2468_v6 = vmul.f32 %v2456_v10, %v2456_v10  ;;  %v2472_v15 = vsub.f32 %v2444_v52, %v2456_v10 }
0x1753   :  { %v2464_v16 = vpop.xlane.xlu0 %2463 }
0x1754   :  { %v2473_v17 = vadd.f32 1e-05, %v2469_v11  ;;  %v2466_v18 = vmul.f32 0.03125, %v2464_v16 }
0x1756   :  { %3349 = vrsqrt.f32 %v2473_v17  ;;  %v2470_v19 = vsub.f32 %v2466_v18, %v2468_v6 }
0x1758   :  { %v2474_v21 = vadd.f32 1e-05, %v2470_v19 }
0x175a   :  { %3351 = vrsqrt.f32 %v2474_v21 }
0x1763   :  { %v3350_v28 = vpop.eup %3349 }
0x1764   :  { %v2477_v29 = vmul.f32 %v3350_v28, %v2471_v27 }
0x1766   :  { %v2485_v30 = vmul.f32 %v2857_v5, %v2477_v29 }
0x1767   :  { %v3352_v4 = vpop.eup %3351 }
0x1768   :  { %v2478_v8 = vmul.f32 %v3352_v4, %v2472_v15  ;;  %v2493_v50 = vadd.f32 %v2858_v31, %v2485_v30 }
0x176a   :  { %v2486_v12 = vmul.f32 %v2857_v5, %v2478_v8 }
0x176c   :  { %v2494_v35 = vadd.f32 %v2858_v31, %v2486_v12 }
0x176e   :  { %v2566_v36 = vpack.c.bf16 %v2494_v35, %v2493_v50 }
0x1770   :  { %3218 = vmatpush3.bf16.msra.mxu1 %v2566_v36 }
0x1773   :  { %3220 = vmatmul.mubr.msk.bf16.vlgmr.msra.gmra.mxu1 %vm82_vm10, %v2565_v47 }
0x1833   :  { %v2604_v42 = vpop.f32.mrf.mxu1 }
0x1835   :  { %v3221_v44 = vpop.f32.mrf.mxu1 }
0x1837   :  { %v2607_v45 = vpop.f32.mrf.mxu1 }
0x1838   :  { %v2616_v57 = vpack.c.bf16 %v2607_v45, %v2604_v42 }
0x1839   :  { %v3222_v46 = vpop.f32.mrf.mxu1 }
0x183a   :  { %3228 = vmatmul.mubr.msk.bf16.vlgmr.msra.gmra.mxu0 %vm202_vm2, %v2616_v57 }
0x18fa   :  { %v2660_v54 = vpop.f32.mrf.mxu0 }
0x18fb   :  { %v2661_v51 = vadd.f32 %v2660_v54, %v2622_v49 }
0x18fc   :  { %v3229_v55 = vpop.f32.mrf.mxu0 }
0x18fd   :  { %2667 = vst [vmem:[%s4069_s11] sm:$0xff] %v2661_v51 }
0x18fe   :  { %v2663_v52 = vpop.f32.mrf.mxu0 }
0x18ff   :  { %v2664_v38 = vadd.f32 %v2663_v52, %v2622_v49 }
0x1900   :  { %v3230_v53 = vpop.f32.mrf.mxu0 }
0x1901   :  { %2668 = vst [vmem:[%s4069_s11 + $0x8] sm:$0xff] %v2664_v38 }

</bundles_post_ra>
